<compile_context>
chip_gen: v6e
topology: v6e:2x2x1
jax: 0.10.0
libtpu: 0.0.40
codegen_flags: <defaults>
</compile_context>

<pallas_src>
import functools

import jax
import jax.numpy as jnp
from jax.experimental import pallas as pl
from jax.experimental.pallas import tpu as pltpu

EPS = 1e-5
CPAD = 128                    # lane-dense channel padding for all kernel outputs
TL_MAX = 512                  # rows (L positions) per grid step; halve for v7x's 64 MiB VMEM
MXU_DTYPE = jnp.bfloat16      # MXU operand dtype (f32 accumulation); float32 for bit-parity
_VMEM_LIMIT = 32 * 1024 * 1024


def _cparams(sem):
    return pltpu.CompilerParams(dimension_semantics=sem, vmem_limit_bytes=_VMEM_LIMIT)


# --------------------------------- kernels -----------------------------------
def _conv_tile(x_ref, w_ref, taps, tl, tlm):
    """Conv for one (TL, CPAD) output tile as len(taps) shifted MXU dots (f32 acc)."""
    acc = None
    for k, (p, o) in enumerate(taps):
        s0 = p * tlm + o                                              # static offset
        xk = x_ref[0, 0, s0:s0 + tl, :]                               # (TL, Cin_stored)
        d = jnp.dot(xk, w_ref[k, :, :], preferred_element_type=jnp.float32)
        acc = d if acc is None else acc + d
    return acc                                                        # (TL, CPAD) f32


def _stats_kernel(taps_list, tl, tlm, l_out, *refs):
    """Pass A: per-channel sum / sum-of-squares for 1..2 conv branches sharing one
    packed input tile (conv1 and the projection shortcut read the same x)."""
    x_ref = refs[0]
    w_refs = refs[1:1 + len(taps_list)]
    stats_ref = refs[-1]
    n, j = pl.program_id(0), pl.program_id(1)

    @pl.when(jnp.logical_and(n == 0, j == 0))
    def _():
        stats_ref[...] = jnp.zeros_like(stats_ref)

    row = j * tl + jax.lax.broadcasted_iota(jnp.int32, (tl, 1), 0)
    valid = row < l_out                                  # mask L-padding rows (last tile)
    parts = []
    for taps, w_ref in zip(taps_list, w_refs):
        y = _conv_tile(x_ref, w_ref, taps, tl, tlm)
        ym = jnp.where(valid, y, 0.0)
        parts.append(jnp.sum(ym, axis=0, keepdims=True))
        parts.append(jnp.sum(ym * y, axis=0, keepdims=True))
    stats_ref[...] += jnp.concatenate(parts, axis=0)


def _bn_apply(y, stats, gamma, beta, inv_n):
    mean = stats[0:1, :] * inv_n
    var = jnp.maximum(stats[1:2, :] * inv_n - mean * mean, 0.0)
    return (y - mean) * (jax.lax.rsqrt(var + EPS) * gamma) + beta


def _conv_bn_kernel(tl, count, relu, res_kind, taps, tlm, taps_r, tlm_r, *refs):
    """Pass B: conv tile -> train-mode BN -> optional residual -> (ReLU).

    res_kind: "none" | "raw" (residual row tensor) | "conv" (second conv+BN branch,
    i.e. the projection shortcut fused in)."""
    x_ref, w_ref, st_ref, g_ref, b_ref = refs[:5]
    inv_n = 1.0 / count
    y = _bn_apply(_conv_tile(x_ref, w_ref, taps, tl, tlm),
                  st_ref[...], g_ref[...], b_ref[...], inv_n)
    if res_kind == "conv":
        xr_ref, wr_ref, str_ref, gr_ref, br_ref, out_ref = refs[5:]
        y = y + _bn_apply(_conv_tile(xr_ref, wr_ref, taps_r, tl, tlm_r),
                          str_ref[...], gr_ref[...], br_ref[...], inv_n)
    elif res_kind == "raw":
        res_ref, out_ref = refs[5:]
        y = y + res_ref[0, :, :].astype(jnp.float32)
    else:
        (out_ref,) = refs[5:]
    if relu:
        y = jnp.maximum(y, 0.0)
    out_ref[0, :, :] = y.astype(out_ref.dtype)


# -------------------------------- wrappers ------------------------------------
def _conv_geometry(stride, convs):
    """Shared phase-packing geometry for conv branches with identical output length.

    convs: list of (kernel_size, padding). Returns (pack_pad, nph, m, taps_per_conv),
    where tap (phase, offset) means padded index j*stride + tap lives at row
    phase*(TL+m) + offset + j of the packed tile."""
    pack_pad = max(p for _, p in convs)
    offs_list, max_off = [], 0
    for k, pad in convs:
        base = pack_pad - pad
        offs = [base + kk for kk in range(k)]
        offs_list.append(offs)
        max_off = max(max_off, offs[-1])
    nph = min(stride, max_off + 1)
    m = max_off // stride
    taps = [tuple((o % stride, o // stride) for o in offs) for offs in offs_list]
    return pack_pad, nph, m, taps


def _pack_phases(x_cl, stride, pack_pad, nph, m, tl, nt):
    """(N, L, C) -> (N, NT, nph*(TL+M), C): per-stride phases, L-tiles with halo."""
    n, _, c = x_cl.shape
    need = nt * tl + m
    xp = jnp.pad(x_cl, ((0, 0), (pack_pad, pack_pad), (0, 0)))
    phases = []
    for p in range(nph):
        ph = xp[:, p::stride, :]
        pad_rows = max(0, need - ph.shape[1])
        ph = jnp.pad(ph, ((0, 0), (0, pad_rows), (0, 0)))[:, :need, :]
        phases.append(ph)
    ph = jnp.stack(phases, axis=1)                                    # (N, nph, need, C)
    idx = (jnp.arange(nt) * tl)[:, None] + jnp.arange(tl + m)[None, :]
    ph = ph[:, :, idx, :]                                             # (N, nph, NT, TL+M, C)
    ph = jnp.transpose(ph, (0, 2, 1, 3, 4)).reshape(n, nt, nph * (tl + m), c)
    return ph.astype(MXU_DTYPE)


def _taps_matrix(w, in_ch):
    """PyTorch (Cout, Cin, K) conv weight -> (K, in_ch, CPAD) tap-major bf16."""
    cout, cin, k = w.shape
    wt = jnp.transpose(w, (2, 1, 0))                                  # (K, Cin, Cout)
    wt = jnp.pad(wt, ((0, 0), (0, in_ch - cin), (0, CPAD - cout)))
    return wt.astype(MXU_DTYPE)


def _pad_vec(v):
    return jnp.pad(v, (0, CPAD - v.shape[0])).reshape(1, CPAD).astype(jnp.float32)


def basic_block_forward(x, params, stride):
    """x: (N, Cin, L) f32 -> (N, planes, L_out) f32 (PyTorch layout, train-mode BN)."""
    n, cin, l = x.shape
    planes = params["w1"].shape[0]
    has_proj = (stride != 1) or (cin != planes)

    cin_p = ((cin + 7) // 8) * 8                                      # sublane-aligned Cin
    x_cl = jnp.pad(jnp.transpose(x, (0, 2, 1)).astype(jnp.float32),
                   ((0, 0), (0, 0), (0, cin_p - cin)))                # channels-last

    # ---- Stage 1: conv1 (k=3, pad=1, stride) [+ projection conv (k=1, pad=0, stride)]
    convs1 = [(3, 1)] + ([(1, 0)] if has_proj else [])
    pack_pad1, nph1, m1, taps1_all = _conv_geometry(stride, convs1)
    l1 = (l + 2 * 1 - 3) // stride + 1
    tl, nt = (l1, 1) if l1 <= TL_MAX else (TL_MAX, pl.cdiv(l1, TL_MAX))
    tlm1 = tl + m1
    xp = _pack_phases(x_cl, stride, pack_pad1, nph1, m1, tl, nt)      # (N,NT,nph1*tlm1,Cin)

    w1 = _taps_matrix(params["w1"], cin_p)
    g1, b1 = _pad_vec(params["g1"]), _pad_vec(params["b1"])
    count = float(n * l1)                                             # rows/channel, all BNs

    x1_spec = pl.BlockSpec((1, 1, nph1 * tlm1, cin_p), lambda i, j: (i, j, 0, 0))
    w1_spec = pl.BlockSpec((3, cin_p, CPAD), lambda i, j: (0, 0, 0))  # VMEM-resident
    vec_spec = pl.BlockSpec((1, CPAD), lambda i, j: (0, 0))           # resident
    st2_spec = pl.BlockSpec((2, CPAD), lambda i, j: (0, 0))           # resident accumulator
    row_spec = pl.BlockSpec((1, tl, CPAD), lambda i, j: (i, j, 0))    # lane-dense tile

    stats1_inputs, stats1_specs = [xp, w1], [x1_spec, w1_spec]
    if has_proj:
        wsc = _taps_matrix(params["wsc"], cin_p)
        gsc, bsc = _pad_vec(params["gsc"]), _pad_vec(params["bsc"])
        wsc_spec = pl.BlockSpec((1, cin_p, CPAD), lambda i, j: (0, 0, 0))
        stats1_inputs.append(wsc)
        stats1_specs.append(wsc_spec)
    nstat = 2 * len(convs1)

    # Pass A1: global batch stats for conv1 (and the projection conv) in one sweep of x.
    stats_all = pl.pallas_call(
        functools.partial(_stats_kernel, taps1_all, tl, tlm1, l1),
        out_shape=jax.ShapeDtypeStruct((nstat, CPAD), jnp.float32),
        grid=(n, nt),
        in_specs=stats1_specs,
        out_specs=pl.BlockSpec((nstat, CPAD), lambda i, j: (0, 0)),
        compiler_params=_cparams(("arbitrary", "arbitrary")),
    )(*stats1_inputs)
    stats1 = stats_all[0:2]
    stats_sc = stats_all[2:4] if has_proj else None

    # Pass B1: h = relu(bn1(conv1(x))); emitted as bf16 (it only feeds the stage-2 MXU)
    # to halve its HBM round trip.
    h_full = pl.pallas_call(
        functools.partial(_conv_bn_kernel, tl, count, True, "none",
                          taps1_all[0], tlm1, None, None),
        out_shape=jax.ShapeDtypeStruct((n, nt * tl, CPAD), MXU_DTYPE),
        grid=(n, nt),
        in_specs=[x1_spec, w1_spec, st2_spec, vec_spec, vec_spec],
        out_specs=row_spec,
        compiler_params=_cparams(("parallel", "parallel")),
    )(xp, w1, stats1, g1, b1)
    h = h_full[:, :l1, :]                                             # (N, L1, CPAD) bf16

    # ---- Stage 2: conv2 (k=3, pad=1, stride=1) + bn2 + shortcut + relu  (L2 == L1) ----
    pack_pad2, nph2, m2, taps2_all = _conv_geometry(1, [(3, 1)])
    tlm2 = tl + m2
    hp = _pack_phases(h, 1, pack_pad2, nph2, m2, tl, nt)              # (N,NT,nph2*tlm2,CPAD)
    w2 = _taps_matrix(params["w2"], CPAD)
    g2, b2 = _pad_vec(params["g2"]), _pad_vec(params["b2"])

    x2_spec = pl.BlockSpec((1, 1, nph2 * tlm2, CPAD), lambda i, j: (i, j, 0, 0))
    w2_spec = pl.BlockSpec((3, CPAD, CPAD), lambda i, j: (0, 0, 0))

    # Pass A2: global batch stats for conv2.
    stats2 = pl.pallas_call(
        functools.partial(_stats_kernel, taps2_all, tl, tlm2, l1),
        out_shape=jax.ShapeDtypeStruct((2, CPAD), jnp.float32),
        grid=(n, nt),
        in_specs=[x2_spec, w2_spec],
        out_specs=st2_spec,
        compiler_params=_cparams(("arbitrary", "arbitrary")),
    )(hp, w2)

    # Pass B2: out = relu(bn2(conv2(h)) + shortcut).  The projection shortcut's conv+BN
    # is recomputed and fused here (never written to HBM); the identity shortcut streams x.
    if has_proj:
        res_kind, taps_r, tlm_r = "conv", taps1_all[1], tlm1
        extra_inputs = [xp, wsc, stats_sc, gsc, bsc]
        extra_specs = [x1_spec, wsc_spec, st2_spec, vec_spec, vec_spec]
    else:
        res_kind, taps_r, tlm_r = "raw", None, None
        res = jnp.pad(x_cl, ((0, 0), (0, nt * tl - l1), (0, CPAD - cin_p)))
        extra_inputs, extra_specs = [res], [row_spec]

    out_full = pl.pallas_call(
        functools.partial(_conv_bn_kernel, tl, count, True, res_kind,
                          taps2_all[0], tlm2, taps_r, tlm_r),
        out_shape=jax.ShapeDtypeStruct((n, nt * tl, CPAD), jnp.float32),
        grid=(n, nt),
        in_specs=[x2_spec, w2_spec, st2_spec, vec_spec, vec_spec] + extra_specs,
        out_specs=row_spec,
        compiler_params=_cparams(("parallel", "parallel")),
    )(hp, w2, stats2, g2, b2, *extra_inputs)

    out = out_full[:, :l1, :planes]
    return jnp.transpose(out, (0, 2, 1))                              # (N, planes, L_out)


# ----------------------------- pure-JAX reference -------------------------------
def _ref_conv1d(x, w, stride, padding):
    return jax.lax.conv_general_dilated(
        x, w, window_strides=(stride,), padding=[(padding, padding)],
        dimension_numbers=("NCH", "OIH", "NCH"))


def _ref_bn(y, gamma, beta):
    mean = jnp.mean(y, axis=(0, 2), keepdims=True)
    var = jnp.mean(jnp.square(y - mean), axis=(0, 2), keepdims=True)
    return (y - mean) * jax.lax.rsqrt(var + EPS) * gamma[None, :, None] + beta[None, :, None]


def ref_forward(x, params, stride):
    planes = params["w1"].shape[0]
    cin = x.shape[1]
    out = jax.nn.relu(_ref_bn(_ref_conv1d(x, params["w1"], stride, 1), params["g1"], params["b1"]))
    out = _ref_bn(_ref_conv1d(out, params["w2"], 1, 1), params["g2"], params["b2"])
    if stride != 1 or cin != planes:
        sc = _ref_bn(_ref_conv1d(x, params["wsc"], stride, 0), params["gsc"], params["bsc"])
    else:
        sc = x
    return jax.nn.relu(out + sc)


# ------------------------------------ main ---------------------------------------
if __name__ == "__main__":
    # Small shapes: batch=2, in_planes=4, planes=8, L=16, stride=2
    # (stride != 1 and in_planes != planes, so the projection shortcut is exercised).
    N, IN_PLANES, PLANES, L, STRIDE = 2, 4, 8, 16, 2

    key = jax.random.PRNGKey(0)
    kx, k1, k2, k3, k4, k5, k6, k7, k8 = jax.random.split(key, 9)

    x = jax.random.normal(kx, (N, IN_PLANES, L), jnp.float32)

    params = {
        "w1": 0.2 * jax.random.normal(k1, (PLANES, IN_PLANES, 3), jnp.float32),
        "g1": 1.0 + 0.1 * jax.random.normal(k2, (PLANES,), jnp.float32),
        "b1": 0.1 * jax.random.normal(k3, (PLANES,), jnp.float32),
        "w2": 0.2 * jax.random.normal(k4, (PLANES, PLANES, 3), jnp.float32),
        "g2": 1.0 + 0.1 * jax.random.normal(k5, (PLANES,), jnp.float32),
        "b2": 0.1 * jax.random.normal(k6, (PLANES,), jnp.float32),
        "wsc": 0.2 * jax.random.normal(k7, (PLANES, IN_PLANES, 1), jnp.float32),
        "gsc": 1.0 + 0.1 * jax.random.normal(k8, (PLANES,), jnp.float32),
        "bsc": jnp.zeros((PLANES,), jnp.float32),
    }

    fwd = jax.jit(functools.partial(basic_block_forward, stride=STRIDE))
    out = jax.block_until_ready(fwd(x, params))
    ref = jax.block_until_ready(ref_forward(x, params, STRIDE))

    assert out.shape == ref.shape == (N, PLANES, (L + 2 - 3) // STRIDE + 1)
    # bf16 MXU operands (f32 accumulation) across two conv+BN stages introduce
    # ~1e-2-scale deviations vs. the pure-f32 reference; set MXU_DTYPE = jnp.float32
    # for tight numeric parity.
    max_diff = float(jnp.max(jnp.abs(out - ref)))
    assert jnp.allclose(out, ref, rtol=5e-2, atol=5e-2), f"max abs diff = {max_diff}"

    print("KERNEL_OK")
</pallas_src>

<mosaic_0001>
module attributes {stable_mosaic.version = 11 : i64} {
  func.func @_stats_kernel(%arg0: i32, %arg1: i32, %arg2: memref<1x1x18x8xbf16, #tpu.memory_space<vmem>>, %arg3: memref<3x8x128xbf16, #tpu.memory_space<vmem>>, %arg4: memref<1x8x128xbf16, #tpu.memory_space<vmem>>, %arg5: memref<4x128xf32, #tpu.memory_space<vmem>>) attributes {dimension_semantics = [#tpu.dimension_semantics<arbitrary>, #tpu.dimension_semantics<arbitrary>], iteration_bounds = array<i64: 2, 1>, scalar_prefetch = 0 : i64, scratch_operands = 0 : i64, tpu.core_type = #tpu.core_type<tc>, window_params = [{transform_indices = @transform_0, window_bounds = array<i64: 1, 1, 18, 8>}, {pipeline_mode = #tpu.pipeline_mode<synchronous>, transform_indices = @transform_1, window_bounds = array<i64: 3, 8, 128>}, {pipeline_mode = #tpu.pipeline_mode<synchronous>, transform_indices = @transform_2, window_bounds = array<i64: 1, 8, 128>}, {pipeline_mode = #tpu.pipeline_mode<synchronous>, transform_indices = @transform_3, window_bounds = array<i64: 4, 128>}]} {
    %c0_i32 = arith.constant 0 : i32
    %0 = arith.cmpi eq, %arg0, %c0_i32 : i32
    %c0_i32_0 = arith.constant 0 : i32
    %1 = arith.cmpi eq, %arg1, %c0_i32_0 : i32
    %2 = arith.andi %0, %1 : i1
    %3 = arith.extui %2 : i1 to i32
    %c0_i32_1 = arith.constant 0 : i32
    %4 = arith.cmpi ne, %3, %c0_i32_1 : i32
    scf.if %4 {
      %cst_40 = arith.constant 0.000000e+00 : f32
      %55 = vector.broadcast %cst_40 : f32 to vector<4x128xf32>
      %c0_41 = arith.constant 0 : index
      %c0_42 = arith.constant 0 : index
      %56 = vector.load %arg5[%c0_41, %c0_42] : memref<4x128xf32, #tpu.memory_space<vmem>>, vector<4x128xf32>
      tpu.vector_store %arg5[%c0_41, %c0_42], %55 {strides = array<i32>} : memref<4x128xf32, #tpu.memory_space<vmem>>, vector<4x128xf32>,
    } else {
    }
    %c8_i32 = arith.constant 8 : i32
    %5 = arith.muli %arg1, %c8_i32 : i32
    %6 = tpu.iota {dimensions = array<i32: 0>} : vector<8x1xi32>
    %7 = vector.broadcast %5 : i32 to vector<8x1xi32>
    %8 = arith.addi %7, %6 : vector<8x1xi32>
    %c8_i32_2 = arith.constant 8 : i32
    %9 = vector.broadcast %c8_i32_2 : i32 to vector<8x1xi32>
    %10 = arith.cmpi slt, %8, %9 : vector<8x1xi32>
    %c0 = arith.constant 0 : index
    %c0_3 = arith.constant 0 : index
    %c0_4 = arith.constant 0 : index
    %c0_5 = arith.constant 0 : index
    %11 = vector.load %arg2[%c0, %c0_3, %c0_4, %c0_5] : memref<1x1x18x8xbf16, #tpu.memory_space<vmem>>, vector<1x1x8x8xbf16>
    %12 = vector.shape_cast %11 : vector<1x1x8x8xbf16> to vector<8x8xbf16>
    %c0_6 = arith.constant 0 : index
    %c0_7 = arith.constant 0 : index
    %c0_8 = arith.constant 0 : index
    %13 = vector.load %arg3[%c0_6, %c0_7, %c0_8] : memref<3x8x128xbf16, #tpu.memory_space<vmem>>, vector<1x8x128xbf16>
    %14 = vector.shape_cast %13 : vector<1x8x128xbf16> to vector<8x128xbf16>
    %cst = arith.constant dense<0.000000e+00> : vector<8x128xf32>
    %15 = tpu.matmul %12, %14, %cst {dimension_numbers = #tpu.dot_dimension_numbers<[1], [0], [0], [1], [0, 0, 1, 1], [], []>} : vector<8x8xbf16>, vector<8x128xbf16>, vector<8x128xf32> -> vector<8x128xf32>
    %c0_9 = arith.constant 0 : index
    %c0_10 = arith.constant 0 : index
    %c9 = arith.constant 9 : index
    %c0_11 = arith.constant 0 : index
    %16 = vector.load %arg2[%c0_9, %c0_10, %c9, %c0_11] : memref<1x1x18x8xbf16, #tpu.memory_space<vmem>>, vector<1x1x8x8xbf16>
    %17 = vector.shape_cast %16 : vector<1x1x8x8xbf16> to vector<8x8xbf16>
    %c1 = arith.constant 1 : index
    %c0_12 = arith.constant 0 : index
    %c0_13 = arith.constant 0 : index
    %18 = vector.load %arg3[%c1, %c0_12, %c0_13] : memref<3x8x128xbf16, #tpu.memory_space<vmem>>, vector<1x8x128xbf16>
    %19 = vector.shape_cast %18 : vector<1x8x128xbf16> to vector<8x128xbf16>
    %cst_14 = arith.constant dense<0.000000e+00> : vector<8x128xf32>
    %20 = tpu.matmul %17, %19, %cst_14 {dimension_numbers = #tpu.dot_dimension_numbers<[1], [0], [0], [1], [0, 0, 1, 1], [], []>} : vector<8x8xbf16>, vector<8x128xbf16>, vector<8x128xf32> -> vector<8x128xf32>
    %21 = arith.addf %15, %20 : vector<8x128xf32>
    %c0_15 = arith.constant 0 : index
    %c0_16 = arith.constant 0 : index
    %c1_17 = arith.constant 1 : index
    %c0_18 = arith.constant 0 : index
    %22 = vector.load %arg2[%c0_15, %c0_16, %c1_17, %c0_18] : memref<1x1x18x8xbf16, #tpu.memory_space<vmem>>, vector<1x1x8x8xbf16>
    %23 = vector.shape_cast %22 : vector<1x1x8x8xbf16> to vector<8x8xbf16>
    %c2 = arith.constant 2 : index
    %c0_19 = arith.constant 0 : index
    %c0_20 = arith.constant 0 : index
    %24 = vector.load %arg3[%c2, %c0_19, %c0_20] : memref<3x8x128xbf16, #tpu.memory_space<vmem>>, vector<1x8x128xbf16>
    %25 = vector.shape_cast %24 : vector<1x8x128xbf16> to vector<8x128xbf16>
    %cst_21 = arith.constant dense<0.000000e+00> : vector<8x128xf32>
    %26 = tpu.matmul %23, %25, %cst_21 {dimension_numbers = #tpu.dot_dimension_numbers<[1], [0], [0], [1], [0, 0, 1, 1], [], []>} : vector<8x8xbf16>, vector<8x128xbf16>, vector<8x128xf32> -> vector<8x128xf32>
    %27 = arith.addf %21, %26 : vector<8x128xf32>
    %cst_22 = arith.constant 0.000000e+00 : f32
    %28 = vector.shape_cast %10 : vector<8x1xi1> to vector<8x1xi1>
    %29 = vector.broadcast %28 : vector<8x1xi1> to vector<8x128xi1>
    %30 = vector.broadcast %cst_22 : f32 to vector<8x128xf32>
    %31 = arith.select %29, %27, %30 : vector<8x128xi1>, vector<8x128xf32>
    %cst_23 = arith.constant dense<0.000000e+00> : vector<128xf32>
    %32 = vector.multi_reduction <add>, %31, %cst_23 [0] : vector<8x128xf32> to vector<128xf32>
    %33 = vector.shape_cast %32 : vector<128xf32> to vector<1x128xf32>
    %34 = arith.mulf %31, %27 : vector<8x128xf32>
    %cst_24 = arith.constant dense<0.000000e+00> : vector<128xf32>
    %35 = vector.multi_reduction <add>, %34, %cst_24 [0] : vector<8x128xf32> to vector<128xf32>
    %36 = vector.shape_cast %35 : vector<128xf32> to vector<1x128xf32>
    %c0_25 = arith.constant 0 : index
    %c0_26 = arith.constant 0 : index
    %c9_27 = arith.constant 9 : index
    %c0_28 = arith.constant 0 : index
    %37 = vector.load %arg2[%c0_25, %c0_26, %c9_27, %c0_28] : memref<1x1x18x8xbf16, #tpu.memory_space<vmem>>, vector<1x1x8x8xbf16>
    %38 = vector.shape_cast %37 : vector<1x1x8x8xbf16> to vector<8x8xbf16>
    %c0_29 = arith.constant 0 : index
    %c0_30 = arith.constant 0 : index
    %c0_31 = arith.constant 0 : index
    %39 = vector.load %arg4[%c0_29, %c0_30, %c0_31] : memref<1x8x128xbf16, #tpu.memory_space<vmem>>, vector<1x8x128xbf16>
    %40 = vector.shape_cast %39 : vector<1x8x128xbf16> to vector<8x128xbf16>
    %cst_32 = arith.constant dense<0.000000e+00> : vector<8x128xf32>
    %41 = tpu.matmul %38, %40, %cst_32 {dimension_numbers = #tpu.dot_dimension_numbers<[1], [0], [0], [1], [0, 0, 1, 1], [], []>} : vector<8x8xbf16>, vector<8x128xbf16>, vector<8x128xf32> -> vector<8x128xf32>
    %cst_33 = arith.constant 0.000000e+00 : f32
    %42 = vector.shape_cast %10 : vector<8x1xi1> to vector<8x1xi1>
    %43 = vector.broadcast %42 : vector<8x1xi1> to vector<8x128xi1>
    %44 = vector.broadcast %cst_33 : f32 to vector<8x128xf32>
    %45 = arith.select %43, %41, %44 : vector<8x128xi1>, vector<8x128xf32>
    %cst_34 = arith.constant dense<0.000000e+00> : vector<128xf32>
    %46 = vector.multi_reduction <add>, %45, %cst_34 [0] : vector<8x128xf32> to vector<128xf32>
    %47 = vector.shape_cast %46 : vector<128xf32> to vector<1x128xf32>
    %48 = arith.mulf %45, %41 : vector<8x128xf32>
    %cst_35 = arith.constant dense<0.000000e+00> : vector<128xf32>
    %49 = vector.multi_reduction <add>, %48, %cst_35 [0] : vector<8x128xf32> to vector<128xf32>
    %50 = vector.shape_cast %49 : vector<128xf32> to vector<1x128xf32>
    %c0_36 = arith.constant 0 : index
    %c0_37 = arith.constant 0 : index
    %51 = vector.load %arg5[%c0_36, %c0_37] : memref<4x128xf32, #tpu.memory_space<vmem>>, vector<4x128xf32>
    %52 = tpu.concatenate %33, %36, %47, %50 in 0 : vector<1x128xf32>, vector<1x128xf32>, vector<1x128xf32>, vector<1x128xf32> -> vector<4x128xf32>
    %53 = arith.addf %51, %52 : vector<4x128xf32>
    %c0_38 = arith.constant 0 : index
    %c0_39 = arith.constant 0 : index
    %54 = vector.load %arg5[%c0_38, %c0_39] : memref<4x128xf32, #tpu.memory_space<vmem>>, vector<4x128xf32>
    tpu.vector_store %arg5[%c0_38, %c0_39], %53 {strides = array<i32>} : memref<4x128xf32, #tpu.memory_space<vmem>>, vector<4x128xf32>,
    return
  }
  func.func @transform_0(%arg0: i32, %arg1: i32) -> (i32, i32, i32, i32) {
    %c0_i32 = arith.constant 0 : i32
    %c0_i32_0 = arith.constant 0 : i32
    %c0_i32_1 = arith.constant 0 : i32
    return %arg0, %arg1, %c0_i32, %c0_i32_0 : i32, i32, i32, i32
  }
  func.func @transform_1(%arg0: i32, %arg1: i32) -> (i32, i32, i32) {
    %c0_i32 = arith.constant 0 : i32
    %c0_i32_0 = arith.constant 0 : i32
    %c0_i32_1 = arith.constant 0 : i32
    %c0_i32_2 = arith.constant 0 : i32
    return %c0_i32, %c0_i32_0, %c0_i32_1 : i32, i32, i32
  }
  func.func @transform_2(%arg0: i32, %arg1: i32) -> (i32, i32, i32) {
    %c0_i32 = arith.constant 0 : i32
    %c0_i32_0 = arith.constant 0 : i32
    %c0_i32_1 = arith.constant 0 : i32
    %c0_i32_2 = arith.constant 0 : i32
    return %c0_i32, %c0_i32_0, %c0_i32_1 : i32, i32, i32
  }
  func.func @transform_3(%arg0: i32, %arg1: i32) -> (i32, i32) {
    %c0_i32 = arith.constant 0 : i32
    %c0_i32_0 = arith.constant 0 : i32
    %c0_i32_1 = arith.constant 0 : i32
    return %c0_i32, %c0_i32_0 : i32, i32
  }
}

module attributes {stable_mosaic.version = 11 : i64} {
  func.func @_conv_bn_kernel(%arg0: i32, %arg1: i32, %arg2: memref<1x1x18x8xbf16, #tpu.memory_space<vmem>>, %arg3: memref<3x8x128xbf16, #tpu.memory_space<vmem>>, %arg4: memref<2x128xf32, #tpu.memory_space<vmem>>, %arg5: memref<1x128xf32, #tpu.memory_space<vmem>>, %arg6: memref<1x128xf32, #tpu.memory_space<vmem>>, %arg7: memref<1x8x128xbf16, #tpu.memory_space<vmem>>) attributes {dimension_semantics = [#tpu.dimension_semantics<parallel>, #tpu.dimension_semantics<parallel>], iteration_bounds = array<i64: 2, 1>, scalar_prefetch = 0 : i64, scratch_operands = 0 : i64, tpu.core_type = #tpu.core_type<tc>, window_params = [{transform_indices = @transform_0, window_bounds = array<i64: 1, 1, 18, 8>}, {pipeline_mode = #tpu.pipeline_mode<synchronous>, transform_indices = @transform_1, window_bounds = array<i64: 3, 8, 128>}, {pipeline_mode = #tpu.pipeline_mode<synchronous>, transform_indices = @transform_2, window_bounds = array<i64: 2, 128>}, {pipeline_mode = #tpu.pipeline_mode<synchronous>, transform_indices = @transform_3, window_bounds = array<i64: 1, 128>}, {pipeline_mode = #tpu.pipeline_mode<synchronous>, transform_indices = @transform_4, window_bounds = array<i64: 1, 128>}, {transform_indices = @transform_5, window_bounds = array<i64: 1, 8, 128>}]} {
    %c0 = arith.constant 0 : index
    %c0_0 = arith.constant 0 : index
    %c0_1 = arith.constant 0 : index
    %c0_2 = arith.constant 0 : index
    %0 = vector.load %arg2[%c0, %c0_0, %c0_1, %c0_2] : memref<1x1x18x8xbf16, #tpu.memory_space<vmem>>, vector<1x1x8x8xbf16>
    %1 = vector.shape_cast %0 : vector<1x1x8x8xbf16> to vector<8x8xbf16>
    %c0_3 = arith.constant 0 : index
    %c0_4 = arith.constant 0 : index
    %c0_5 = arith.constant 0 : index
    %2 = vector.load %arg3[%c0_3, %c0_4, %c0_5] : memref<3x8x128xbf16, #tpu.memory_space<vmem>>, vector<1x8x128xbf16>
    %3 = vector.shape_cast %2 : vector<1x8x128xbf16> to vector<8x128xbf16>
    %cst = arith.constant dense<0.000000e+00> : vector<8x128xf32>
    %4 = tpu.matmul %1, %3, %cst {dimension_numbers = #tpu.dot_dimension_numbers<[1], [0], [0], [1], [0, 0, 1, 1], [], []>} : vector<8x8xbf16>, vector<8x128xbf16>, vector<8x128xf32> -> vector<8x128xf32>
    %c0_6 = arith.constant 0 : index
    %c0_7 = arith.constant 0 : index
    %c9 = arith.constant 9 : index
    %c0_8 = arith.constant 0 : index
    %5 = vector.load %arg2[%c0_6, %c0_7, %c9, %c0_8] : memref<1x1x18x8xbf16, #tpu.memory_space<vmem>>, vector<1x1x8x8xbf16>
    %6 = vector.shape_cast %5 : vector<1x1x8x8xbf16> to vector<8x8xbf16>
    %c1 = arith.constant 1 : index
    %c0_9 = arith.constant 0 : index
    %c0_10 = arith.constant 0 : index
    %7 = vector.load %arg3[%c1, %c0_9, %c0_10] : memref<3x8x128xbf16, #tpu.memory_space<vmem>>, vector<1x8x128xbf16>
    %8 = vector.shape_cast %7 : vector<1x8x128xbf16> to vector<8x128xbf16>
    %cst_11 = arith.constant dense<0.000000e+00> : vector<8x128xf32>
    %9 = tpu.matmul %6, %8, %cst_11 {dimension_numbers = #tpu.dot_dimension_numbers<[1], [0], [0], [1], [0, 0, 1, 1], [], []>} : vector<8x8xbf16>, vector<8x128xbf16>, vector<8x128xf32> -> vector<8x128xf32>
    %10 = arith.addf %4, %9 : vector<8x128xf32>
    %c0_12 = arith.constant 0 : index
    %c0_13 = arith.constant 0 : index
    %c1_14 = arith.constant 1 : index
    %c0_15 = arith.constant 0 : index
    %11 = vector.load %arg2[%c0_12, %c0_13, %c1_14, %c0_15] : memref<1x1x18x8xbf16, #tpu.memory_space<vmem>>, vector<1x1x8x8xbf16>
    %12 = vector.shape_cast %11 : vector<1x1x8x8xbf16> to vector<8x8xbf16>
    %c2 = arith.constant 2 : index
    %c0_16 = arith.constant 0 : index
    %c0_17 = arith.constant 0 : index
    %13 = vector.load %arg3[%c2, %c0_16, %c0_17] : memref<3x8x128xbf16, #tpu.memory_space<vmem>>, vector<1x8x128xbf16>
    %14 = vector.shape_cast %13 : vector<1x8x128xbf16> to vector<8x128xbf16>
    %cst_18 = arith.constant dense<0.000000e+00> : vector<8x128xf32>
    %15 = tpu.matmul %12, %14, %cst_18 {dimension_numbers = #tpu.dot_dimension_numbers<[1], [0], [0], [1], [0, 0, 1, 1], [], []>} : vector<8x8xbf16>, vector<8x128xbf16>, vector<8x128xf32> -> vector<8x128xf32>
    %16 = arith.addf %10, %15 : vector<8x128xf32>
    %c0_19 = arith.constant 0 : index
    %c0_20 = arith.constant 0 : index
    %17 = vector.load %arg4[%c0_19, %c0_20] : memref<2x128xf32, #tpu.memory_space<vmem>>, vector<2x128xf32>
    %c0_21 = arith.constant 0 : index
    %c0_22 = arith.constant 0 : index
    %18 = vector.load %arg5[%c0_21, %c0_22] : memref<1x128xf32, #tpu.memory_space<vmem>>, vector<1x128xf32>
    %c0_23 = arith.constant 0 : index
    %c0_24 = arith.constant 0 : index
    %19 = vector.load %arg6[%c0_23, %c0_24] : memref<1x128xf32, #tpu.memory_space<vmem>>, vector<1x128xf32>
    %20 = vector.extract_strided_slice %17 {offsets = [0, 0], sizes = [1, 128], strides = [1, 1]} : vector<2x128xf32> to vector<1x128xf32>
    %cst_25 = arith.constant 6.250000e-02 : f32
    %21 = vector.broadcast %cst_25 : f32 to vector<1x128xf32>
    %22 = arith.mulf %20, %21 : vector<1x128xf32>
    %23 = vector.extract_strided_slice %17 {offsets = [1, 0], sizes = [1, 128], strides = [1, 1]} : vector<2x128xf32> to vector<1x128xf32>
    %cst_26 = arith.constant 6.250000e-02 : f32
    %24 = vector.broadcast %cst_26 : f32 to vector<1x128xf32>
    %25 = arith.mulf %23, %24 : vector<1x128xf32>
    %26 = arith.mulf %22, %22 : vector<1x128xf32>
    %27 = arith.subf %25, %26 : vector<1x128xf32>
    %cst_27 = arith.constant 0.000000e+00 : f32
    %28 = vector.broadcast %cst_27 : f32 to vector<1x128xf32>
    %29 = arith.maximumf %27, %28 : vector<1x128xf32>
    %30 = vector.broadcast %22 : vector<1x128xf32> to vector<8x128xf32>
    %31 = arith.subf %16, %30 : vector<8x128xf32>
    %cst_28 = arith.constant 9.99999974E-6 : f32
    %32 = vector.broadcast %cst_28 : f32 to vector<1x128xf32>
    %33 = arith.addf %29, %32 : vector<1x128xf32>
    %34 = math.rsqrt %33 : vector<1x128xf32>
    %35 = arith.mulf %34, %18 : vector<1x128xf32>
    %36 = vector.broadcast %35 : vector<1x128xf32> to vector<8x128xf32>
    %37 = arith.mulf %31, %36 : vector<8x128xf32>
    %38 = vector.broadcast %19 : vector<1x128xf32> to vector<8x128xf32>
    %39 = arith.addf %37, %38 : vector<8x128xf32>
    %cst_29 = arith.constant 0.000000e+00 : f32
    %40 = vector.broadcast %cst_29 : f32 to vector<8x128xf32>
    %41 = arith.maximumf %39, %40 : vector<8x128xf32>
    %42 = arith.truncf %41 : vector<8x128xf32> to vector<8x128xbf16>
    %c0_30 = arith.constant 0 : index
    %c0_31 = arith.constant 0 : index
    %c0_32 = arith.constant 0 : index
    %43 = vector.load %arg7[%c0_30, %c0_31, %c0_32] : memref<1x8x128xbf16, #tpu.memory_space<vmem>>, vector<1x8x128xbf16>
    %44 = vector.shape_cast %43 : vector<1x8x128xbf16> to vector<8x128xbf16>
    %45 = vector.shape_cast %42 : vector<8x128xbf16> to vector<1x8x128xbf16>
    tpu.vector_store %arg7[%c0_30, %c0_31, %c0_32], %45 {strides = array<i32>} : memref<1x8x128xbf16, #tpu.memory_space<vmem>>, vector<1x8x128xbf16>,
    return
  }
  func.func @transform_0(%arg0: i32, %arg1: i32) -> (i32, i32, i32, i32) {
    %c0_i32 = arith.constant 0 : i32
    %c0_i32_0 = arith.constant 0 : i32
    %c0_i32_1 = arith.constant 0 : i32
    return %arg0, %arg1, %c0_i32, %c0_i32_0 : i32, i32, i32, i32
  }
  func.func @transform_1(%arg0: i32, %arg1: i32) -> (i32, i32, i32) {
    %c0_i32 = arith.constant 0 : i32
    %c0_i32_0 = arith.constant 0 : i32
    %c0_i32_1 = arith.constant 0 : i32
    %c0_i32_2 = arith.constant 0 : i32
    return %c0_i32, %c0_i32_0, %c0_i32_1 : i32, i32, i32
  }
  func.func @transform_2(%arg0: i32, %arg1: i32) -> (i32, i32) {
    %c0_i32 = arith.constant 0 : i32
    %c0_i32_0 = arith.constant 0 : i32
    %c0_i32_1 = arith.constant 0 : i32
    return %c0_i32, %c0_i32_0 : i32, i32
  }
  func.func @transform_3(%arg0: i32, %arg1: i32) -> (i32, i32) {
    %c0_i32 = arith.constant 0 : i32
    %c0_i32_0 = arith.constant 0 : i32
    %c0_i32_1 = arith.constant 0 : i32
    return %c0_i32, %c0_i32_0 : i32, i32
  }
  func.func @transform_4(%arg0: i32, %arg1: i32) -> (i32, i32) {
    %c0_i32 = arith.constant 0 : i32
    %c0_i32_0 = arith.constant 0 : i32
    %c0_i32_1 = arith.constant 0 : i32
    return %c0_i32, %c0_i32_0 : i32, i32
  }
  func.func @transform_5(%arg0: i32, %arg1: i32) -> (i32, i32, i32) {
    %c0_i32 = arith.constant 0 : i32
    %c0_i32_0 = arith.constant 0 : i32
    return %arg0, %arg1, %c0_i32 : i32, i32, i32
  }
}

module attributes {stable_mosaic.version = 11 : i64} {
  func.func @_stats_kernel(%arg0: i32, %arg1: i32, %arg2: memref<1x1x10x128xbf16, #tpu.memory_space<vmem>>, %arg3: memref<3x128x128xbf16, #tpu.memory_space<vmem>>, %arg4: memref<2x128xf32, #tpu.memory_space<vmem>>) attributes {dimension_semantics = [#tpu.dimension_semantics<arbitrary>, #tpu.dimension_semantics<arbitrary>], iteration_bounds = array<i64: 2, 1>, scalar_prefetch = 0 : i64, scratch_operands = 0 : i64, tpu.core_type = #tpu.core_type<tc>, window_params = [{transform_indices = @transform_0, window_bounds = array<i64: 1, 1, 10, 128>}, {pipeline_mode = #tpu.pipeline_mode<synchronous>, transform_indices = @transform_1, window_bounds = array<i64: 3, 128, 128>}, {pipeline_mode = #tpu.pipeline_mode<synchronous>, transform_indices = @transform_2, window_bounds = array<i64: 2, 128>}]} {
    %c0_i32 = arith.constant 0 : i32
    %0 = arith.cmpi eq, %arg0, %c0_i32 : i32
    %c0_i32_0 = arith.constant 0 : i32
    %1 = arith.cmpi eq, %arg1, %c0_i32_0 : i32
    %2 = arith.andi %0, %1 : i1
    %3 = arith.extui %2 : i1 to i32
    %c0_i32_1 = arith.constant 0 : i32
    %4 = arith.cmpi ne, %3, %c0_i32_1 : i32
    scf.if %4 {
      %cst_30 = arith.constant 0.000000e+00 : f32
      %41 = vector.broadcast %cst_30 : f32 to vector<2x128xf32>
      %c0_31 = arith.constant 0 : index
      %c0_32 = arith.constant 0 : index
      %42 = vector.load %arg4[%c0_31, %c0_32] : memref<2x128xf32, #tpu.memory_space<vmem>>, vector<2x128xf32>
      tpu.vector_store %arg4[%c0_31, %c0_32], %41 {strides = array<i32>} : memref<2x128xf32, #tpu.memory_space<vmem>>, vector<2x128xf32>,
    } else {
    }
    %c8_i32 = arith.constant 8 : i32
    %5 = arith.muli %arg1, %c8_i32 : i32
    %6 = tpu.iota {dimensions = array<i32: 0>} : vector<8x1xi32>
    %7 = vector.broadcast %5 : i32 to vector<8x1xi32>
    %8 = arith.addi %7, %6 : vector<8x1xi32>
    %c8_i32_2 = arith.constant 8 : i32
    %9 = vector.broadcast %c8_i32_2 : i32 to vector<8x1xi32>
    %10 = arith.cmpi slt, %8, %9 : vector<8x1xi32>
    %c0 = arith.constant 0 : index
    %c0_3 = arith.constant 0 : index
    %c0_4 = arith.constant 0 : index
    %c0_5 = arith.constant 0 : index
    %11 = vector.load %arg2[%c0, %c0_3, %c0_4, %c0_5] : memref<1x1x10x128xbf16, #tpu.memory_space<vmem>>, vector<1x1x8x128xbf16>
    %12 = vector.shape_cast %11 : vector<1x1x8x128xbf16> to vector<8x128xbf16>
    %c0_6 = arith.constant 0 : index
    %c0_7 = arith.constant 0 : index
    %c0_8 = arith.constant 0 : index
    %13 = vector.load %arg3[%c0_6, %c0_7, %c0_8] : memref<3x128x128xbf16, #tpu.memory_space<vmem>>, vector<1x128x128xbf16>
    %14 = vector.shape_cast %13 : vector<1x128x128xbf16> to vector<128x128xbf16>
    %cst = arith.constant dense<0.000000e+00> : vector<8x128xf32>
    %15 = tpu.matmul %12, %14, %cst {dimension_numbers = #tpu.dot_dimension_numbers<[1], [0], [0], [1], [0, 0, 1, 1], [], []>} : vector<8x128xbf16>, vector<128x128xbf16>, vector<8x128xf32> -> vector<8x128xf32>
    %c0_9 = arith.constant 0 : index
    %c0_10 = arith.constant 0 : index
    %c1 = arith.constant 1 : index
    %c0_11 = arith.constant 0 : index
    %16 = vector.load %arg2[%c0_9, %c0_10, %c1, %c0_11] : memref<1x1x10x128xbf16, #tpu.memory_space<vmem>>, vector<1x1x8x128xbf16>
    %17 = vector.shape_cast %16 : vector<1x1x8x128xbf16> to vector<8x128xbf16>
    %c1_12 = arith.constant 1 : index
    %c0_13 = arith.constant 0 : index
    %c0_14 = arith.constant 0 : index
    %18 = vector.load %arg3[%c1_12, %c0_13, %c0_14] : memref<3x128x128xbf16, #tpu.memory_space<vmem>>, vector<1x128x128xbf16>
    %19 = vector.shape_cast %18 : vector<1x128x128xbf16> to vector<128x128xbf16>
    %cst_15 = arith.constant dense<0.000000e+00> : vector<8x128xf32>
    %20 = tpu.matmul %17, %19, %cst_15 {dimension_numbers = #tpu.dot_dimension_numbers<[1], [0], [0], [1], [0, 0, 1, 1], [], []>} : vector<8x128xbf16>, vector<128x128xbf16>, vector<8x128xf32> -> vector<8x128xf32>
    %21 = arith.addf %15, %20 : vector<8x128xf32>
    %c0_16 = arith.constant 0 : index
    %c0_17 = arith.constant 0 : index
    %c2 = arith.constant 2 : index
    %c0_18 = arith.constant 0 : index
    %22 = vector.load %arg2[%c0_16, %c0_17, %c2, %c0_18] : memref<1x1x10x128xbf16, #tpu.memory_space<vmem>>, vector<1x1x8x128xbf16>
    %23 = vector.shape_cast %22 : vector<1x1x8x128xbf16> to vector<8x128xbf16>
    %c2_19 = arith.constant 2 : index
    %c0_20 = arith.constant 0 : index
    %c0_21 = arith.constant 0 : index
    %24 = vector.load %arg3[%c2_19, %c0_20, %c0_21] : memref<3x128x128xbf16, #tpu.memory_space<vmem>>, vector<1x128x128xbf16>
    %25 = vector.shape_cast %24 : vector<1x128x128xbf16> to vector<128x128xbf16>
    %cst_22 = arith.constant dense<0.000000e+00> : vector<8x128xf32>
    %26 = tpu.matmul %23, %25, %cst_22 {dimension_numbers = #tpu.dot_dimension_numbers<[1], [0], [0], [1], [0, 0, 1, 1], [], []>} : vector<8x128xbf16>, vector<128x128xbf16>, vector<8x128xf32> -> vector<8x128xf32>
    %27 = arith.addf %21, %26 : vector<8x128xf32>
    %cst_23 = arith.constant 0.000000e+00 : f32
    %28 = vector.shape_cast %10 : vector<8x1xi1> to vector<8x1xi1>
    %29 = vector.broadcast %28 : vector<8x1xi1> to vector<8x128xi1>
    %30 = vector.broadcast %cst_23 : f32 to vector<8x128xf32>
    %31 = arith.select %29, %27, %30 : vector<8x128xi1>, vector<8x128xf32>
    %cst_24 = arith.constant dense<0.000000e+00> : vector<128xf32>
    %32 = vector.multi_reduction <add>, %31, %cst_24 [0] : vector<8x128xf32> to vector<128xf32>
    %33 = vector.shape_cast %32 : vector<128xf32> to vector<1x128xf32>
    %34 = arith.mulf %31, %27 : vector<8x128xf32>
    %cst_25 = arith.constant dense<0.000000e+00> : vector<128xf32>
    %35 = vector.multi_reduction <add>, %34, %cst_25 [0] : vector<8x128xf32> to vector<128xf32>
    %36 = vector.shape_cast %35 : vector<128xf32> to vector<1x128xf32>
    %c0_26 = arith.constant 0 : index
    %c0_27 = arith.constant 0 : index
    %37 = vector.load %arg4[%c0_26, %c0_27] : memref<2x128xf32, #tpu.memory_space<vmem>>, vector<2x128xf32>
    %38 = tpu.concatenate %33, %36 in 0 : vector<1x128xf32>, vector<1x128xf32> -> vector<2x128xf32>
    %39 = arith.addf %37, %38 : vector<2x128xf32>
    %c0_28 = arith.constant 0 : index
    %c0_29 = arith.constant 0 : index
    %40 = vector.load %arg4[%c0_28, %c0_29] : memref<2x128xf32, #tpu.memory_space<vmem>>, vector<2x128xf32>
    tpu.vector_store %arg4[%c0_28, %c0_29], %39 {strides = array<i32>} : memref<2x128xf32, #tpu.memory_space<vmem>>, vector<2x128xf32>,
    return
  }
  func.func @transform_0(%arg0: i32, %arg1: i32) -> (i32, i32, i32, i32) {
    %c0_i32 = arith.constant 0 : i32
    %c0_i32_0 = arith.constant 0 : i32
    %c0_i32_1 = arith.constant 0 : i32
    return %arg0, %arg1, %c0_i32, %c0_i32_0 : i32, i32, i32, i32
  }
  func.func @transform_1(%arg0: i32, %arg1: i32) -> (i32, i32, i32) {
    %c0_i32 = arith.constant 0 : i32
    %c0_i32_0 = arith.constant 0 : i32
    %c0_i32_1 = arith.constant 0 : i32
    %c0_i32_2 = arith.constant 0 : i32
    return %c0_i32, %c0_i32_0, %c0_i32_1 : i32, i32, i32
  }
  func.func @transform_2(%arg0: i32, %arg1: i32) -> (i32, i32) {
    %c0_i32 = arith.constant 0 : i32
    %c0_i32_0 = arith.constant 0 : i32
    %c0_i32_1 = arith.constant 0 : i32
    return %c0_i32, %c0_i32_0 : i32, i32
  }
}

module attributes {stable_mosaic.version = 11 : i64} {
  func.func @_conv_bn_kernel(%arg0: i32, %arg1: i32, %arg2: memref<1x1x10x128xbf16, #tpu.memory_space<vmem>>, %arg3: memref<3x128x128xbf16, #tpu.memory_space<vmem>>, %arg4: memref<2x128xf32, #tpu.memory_space<vmem>>, %arg5: memref<1x128xf32, #tpu.memory_space<vmem>>, %arg6: memref<1x128xf32, #tpu.memory_space<vmem>>, %arg7: memref<1x1x18x8xbf16, #tpu.memory_space<vmem>>, %arg8: memref<1x8x128xbf16, #tpu.memory_space<vmem>>, %arg9: memref<2x128xf32, #tpu.memory_space<vmem>>, %arg10: memref<1x128xf32, #tpu.memory_space<vmem>>, %arg11: memref<1x128xf32, #tpu.memory_space<vmem>>, %arg12: memref<1x8x128xf32, #tpu.memory_space<vmem>>) attributes {dimension_semantics = [#tpu.dimension_semantics<parallel>, #tpu.dimension_semantics<parallel>], iteration_bounds = array<i64: 2, 1>, scalar_prefetch = 0 : i64, scratch_operands = 0 : i64, tpu.core_type = #tpu.core_type<tc>, window_params = [{transform_indices = @transform_0, window_bounds = array<i64: 1, 1, 10, 128>}, {pipeline_mode = #tpu.pipeline_mode<synchronous>, transform_indices = @transform_1, window_bounds = array<i64: 3, 128, 128>}, {pipeline_mode = #tpu.pipeline_mode<synchronous>, transform_indices = @transform_2, window_bounds = array<i64: 2, 128>}, {pipeline_mode = #tpu.pipeline_mode<synchronous>, transform_indices = @transform_3, window_bounds = array<i64: 1, 128>}, {pipeline_mode = #tpu.pipeline_mode<synchronous>, transform_indices = @transform_4, window_bounds = array<i64: 1, 128>}, {transform_indices = @transform_5, window_bounds = array<i64: 1, 1, 18, 8>}, {pipeline_mode = #tpu.pipeline_mode<synchronous>, transform_indices = @transform_6, window_bounds = array<i64: 1, 8, 128>}, {pipeline_mode = #tpu.pipeline_mode<synchronous>, transform_indices = @transform_7, window_bounds = array<i64: 2, 128>}, {pipeline_mode = #tpu.pipeline_mode<synchronous>, transform_indices = @transform_8, window_bounds = array<i64: 1, 128>}, {pipeline_mode = #tpu.pipeline_mode<synchronous>, transform_indices = @transform_9, window_bounds = array<i64: 1, 128>}, {transform_indices = @transform_10, window_bounds = array<i64: 1, 8, 128>}]} {
    %c0 = arith.constant 0 : index
    %c0_0 = arith.constant 0 : index
    %c0_1 = arith.constant 0 : index
    %c0_2 = arith.constant 0 : index
    %0 = vector.load %arg2[%c0, %c0_0, %c0_1, %c0_2] : memref<1x1x10x128xbf16, #tpu.memory_space<vmem>>, vector<1x1x8x128xbf16>
    %1 = vector.shape_cast %0 : vector<1x1x8x128xbf16> to vector<8x128xbf16>
    %c0_3 = arith.constant 0 : index
    %c0_4 = arith.constant 0 : index
    %c0_5 = arith.constant 0 : index
    %2 = vector.load %arg3[%c0_3, %c0_4, %c0_5] : memref<3x128x128xbf16, #tpu.memory_space<vmem>>, vector<1x128x128xbf16>
    %3 = vector.shape_cast %2 : vector<1x128x128xbf16> to vector<128x128xbf16>
    %cst = arith.constant dense<0.000000e+00> : vector<8x128xf32>
    %4 = tpu.matmul %1, %3, %cst {dimension_numbers = #tpu.dot_dimension_numbers<[1], [0], [0], [1], [0, 0, 1, 1], [], []>} : vector<8x128xbf16>, vector<128x128xbf16>, vector<8x128xf32> -> vector<8x128xf32>
    %c0_6 = arith.constant 0 : index
    %c0_7 = arith.constant 0 : index
    %c1 = arith.constant 1 : index
    %c0_8 = arith.constant 0 : index
    %5 = vector.load %arg2[%c0_6, %c0_7, %c1, %c0_8] : memref<1x1x10x128xbf16, #tpu.memory_space<vmem>>, vector<1x1x8x128xbf16>
    %6 = vector.shape_cast %5 : vector<1x1x8x128xbf16> to vector<8x128xbf16>
    %c1_9 = arith.constant 1 : index
    %c0_10 = arith.constant 0 : index
    %c0_11 = arith.constant 0 : index
    %7 = vector.load %arg3[%c1_9, %c0_10, %c0_11] : memref<3x128x128xbf16, #tpu.memory_space<vmem>>, vector<1x128x128xbf16>
    %8 = vector.shape_cast %7 : vector<1x128x128xbf16> to vector<128x128xbf16>
    %cst_12 = arith.constant dense<0.000000e+00> : vector<8x128xf32>
    %9 = tpu.matmul %6, %8, %cst_12 {dimension_numbers = #tpu.dot_dimension_numbers<[1], [0], [0], [1], [0, 0, 1, 1], [], []>} : vector<8x128xbf16>, vector<128x128xbf16>, vector<8x128xf32> -> vector<8x128xf32>
    %10 = arith.addf %4, %9 : vector<8x128xf32>
    %c0_13 = arith.constant 0 : index
    %c0_14 = arith.constant 0 : index
    %c2 = arith.constant 2 : index
    %c0_15 = arith.constant 0 : index
    %11 = vector.load %arg2[%c0_13, %c0_14, %c2, %c0_15] : memref<1x1x10x128xbf16, #tpu.memory_space<vmem>>, vector<1x1x8x128xbf16>
    %12 = vector.shape_cast %11 : vector<1x1x8x128xbf16> to vector<8x128xbf16>
    %c2_16 = arith.constant 2 : index
    %c0_17 = arith.constant 0 : index
    %c0_18 = arith.constant 0 : index
    %13 = vector.load %arg3[%c2_16, %c0_17, %c0_18] : memref<3x128x128xbf16, #tpu.memory_space<vmem>>, vector<1x128x128xbf16>
    %14 = vector.shape_cast %13 : vector<1x128x128xbf16> to vector<128x128xbf16>
    %cst_19 = arith.constant dense<0.000000e+00> : vector<8x128xf32>
    %15 = tpu.matmul %12, %14, %cst_19 {dimension_numbers = #tpu.dot_dimension_numbers<[1], [0], [0], [1], [0, 0, 1, 1], [], []>} : vector<8x128xbf16>, vector<128x128xbf16>, vector<8x128xf32> -> vector<8x128xf32>
    %16 = arith.addf %10, %15 : vector<8x128xf32>
    %c0_20 = arith.constant 0 : index
    %c0_21 = arith.constant 0 : index
    %17 = vector.load %arg4[%c0_20, %c0_21] : memref<2x128xf32, #tpu.memory_space<vmem>>, vector<2x128xf32>
    %c0_22 = arith.constant 0 : index
    %c0_23 = arith.constant 0 : index
    %18 = vector.load %arg5[%c0_22, %c0_23] : memref<1x128xf32, #tpu.memory_space<vmem>>, vector<1x128xf32>
    %c0_24 = arith.constant 0 : index
    %c0_25 = arith.constant 0 : index
    %19 = vector.load %arg6[%c0_24, %c0_25] : memref<1x128xf32, #tpu.memory_space<vmem>>, vector<1x128xf32>
    %20 = vector.extract_strided_slice %17 {offsets = [0, 0], sizes = [1, 128], strides = [1, 1]} : vector<2x128xf32> to vector<1x128xf32>
    %cst_26 = arith.constant 6.250000e-02 : f32
    %21 = vector.broadcast %cst_26 : f32 to vector<1x128xf32>
    %22 = arith.mulf %20, %21 : vector<1x128xf32>
    %23 = vector.extract_strided_slice %17 {offsets = [1, 0], sizes = [1, 128], strides = [1, 1]} : vector<2x128xf32> to vector<1x128xf32>
    %cst_27 = arith.constant 6.250000e-02 : f32
    %24 = vector.broadcast %cst_27 : f32 to vector<1x128xf32>
    %25 = arith.mulf %23, %24 : vector<1x128xf32>
    %26 = arith.mulf %22, %22 : vector<1x128xf32>
    %27 = arith.subf %25, %26 : vector<1x128xf32>
    %cst_28 = arith.constant 0.000000e+00 : f32
    %28 = vector.broadcast %cst_28 : f32 to vector<1x128xf32>
    %29 = arith.maximumf %27, %28 : vector<1x128xf32>
    %30 = vector.broadcast %22 : vector<1x128xf32> to vector<8x128xf32>
    %31 = arith.subf %16, %30 : vector<8x128xf32>
    %cst_29 = arith.constant 9.99999974E-6 : f32
    %32 = vector.broadcast %cst_29 : f32 to vector<1x128xf32>
    %33 = arith.addf %29, %32 : vector<1x128xf32>
    %34 = math.rsqrt %33 : vector<1x128xf32>
    %35 = arith.mulf %34, %18 : vector<1x128xf32>
    %36 = vector.broadcast %35 : vector<1x128xf32> to vector<8x128xf32>
    %37 = arith.mulf %31, %36 : vector<8x128xf32>
    %38 = vector.broadcast %19 : vector<1x128xf32> to vector<8x128xf32>
    %39 = arith.addf %37, %38 : vector<8x128xf32>
    %c0_30 = arith.constant 0 : index
    %c0_31 = arith.constant 0 : index
    %c9 = arith.constant 9 : index
    %c0_32 = arith.constant 0 : index
    %40 = vector.load %arg7[%c0_30, %c0_31, %c9, %c0_32] : memref<1x1x18x8xbf16, #tpu.memory_space<vmem>>, vector<1x1x8x8xbf16>
    %41 = vector.shape_cast %40 : vector<1x1x8x8xbf16> to vector<8x8xbf16>
    %c0_33 = arith.constant 0 : index
    %c0_34 = arith.constant 0 : index
    %c0_35 = arith.constant 0 : index
    %42 = vector.load %arg8[%c0_33, %c0_34, %c0_35] : memref<1x8x128xbf16, #tpu.memory_space<vmem>>, vector<1x8x128xbf16>
    %43 = vector.shape_cast %42 : vector<1x8x128xbf16> to vector<8x128xbf16>
    %cst_36 = arith.constant dense<0.000000e+00> : vector<8x128xf32>
    %44 = tpu.matmul %41, %43, %cst_36 {dimension_numbers = #tpu.dot_dimension_numbers<[1], [0], [0], [1], [0, 0, 1, 1], [], []>} : vector<8x8xbf16>, vector<8x128xbf16>, vector<8x128xf32> -> vector<8x128xf32>
    %c0_37 = arith.constant 0 : index
    %c0_38 = arith.constant 0 : index
    %45 = vector.load %arg9[%c0_37, %c0_38] : memref<2x128xf32, #tpu.memory_space<vmem>>, vector<2x128xf32>
    %c0_39 = arith.constant 0 : index
    %c0_40 = arith.constant 0 : index
    %46 = vector.load %arg10[%c0_39, %c0_40] : memref<1x128xf32, #tpu.memory_space<vmem>>, vector<1x128xf32>
    %c0_41 = arith.constant 0 : index
    %c0_42 = arith.constant 0 : index
    %47 = vector.load %arg11[%c0_41, %c0_42] : memref<1x128xf32, #tpu.memory_space<vmem>>, vector<1x128xf32>
    %48 = vector.extract_strided_slice %45 {offsets = [0, 0], sizes = [1, 128], strides = [1, 1]} : vector<2x128xf32> to vector<1x128xf32>
    %cst_43 = arith.constant 6.250000e-02 : f32
    %49 = vector.broadcast %cst_43 : f32 to vector<1x128xf32>
    %50 = arith.mulf %48, %49 : vector<1x128xf32>
    %51 = vector.extract_strided_slice %45 {offsets = [1, 0], sizes = [1, 128], strides = [1, 1]} : vector<2x128xf32> to vector<1x128xf32>
    %cst_44 = arith.constant 6.250000e-02 : f32
    %52 = vector.broadcast %cst_44 : f32 to vector<1x128xf32>
    %53 = arith.mulf %51, %52 : vector<1x128xf32>
    %54 = arith.mulf %50, %50 : vector<1x128xf32>
    %55 = arith.subf %53, %54 : vector<1x128xf32>
    %cst_45 = arith.constant 0.000000e+00 : f32
    %56 = vector.broadcast %cst_45 : f32 to vector<1x128xf32>
    %57 = arith.maximumf %55, %56 : vector<1x128xf32>
    %58 = vector.broadcast %50 : vector<1x128xf32> to vector<8x128xf32>
    %59 = arith.subf %44, %58 : vector<8x128xf32>
    %cst_46 = arith.constant 9.99999974E-6 : f32
    %60 = vector.broadcast %cst_46 : f32 to vector<1x128xf32>
    %61 = arith.addf %57, %60 : vector<1x128xf32>
    %62 = math.rsqrt %61 : vector<1x128xf32>
    %63 = arith.mulf %62, %46 : vector<1x128xf32>
    %64 = vector.broadcast %63 : vector<1x128xf32> to vector<8x128xf32>
    %65 = arith.mulf %59, %64 : vector<8x128xf32>
    %66 = vector.broadcast %47 : vector<1x128xf32> to vector<8x128xf32>
    %67 = arith.addf %65, %66 : vector<8x128xf32>
    %68 = arith.addf %39, %67 : vector<8x128xf32>
    %cst_47 = arith.constant 0.000000e+00 : f32
    %69 = vector.broadcast %cst_47 : f32 to vector<8x128xf32>
    %70 = arith.maximumf %68, %69 : vector<8x128xf32>
    %c0_48 = arith.constant 0 : index
    %c0_49 = arith.constant 0 : index
    %c0_50 = arith.constant 0 : index
    %71 = vector.load %arg12[%c0_48, %c0_49, %c0_50] : memref<1x8x128xf32, #tpu.memory_space<vmem>>, vector<1x8x128xf32>
    %72 = vector.shape_cast %71 : vector<1x8x128xf32> to vector<8x128xf32>
    %73 = vector.shape_cast %70 : vector<8x128xf32> to vector<1x8x128xf32>
    tpu.vector_store %arg12[%c0_48, %c0_49, %c0_50], %73 {strides = array<i32>} : memref<1x8x128xf32, #tpu.memory_space<vmem>>, vector<1x8x128xf32>,
    return
  }
  func.func @transform_0(%arg0: i32, %arg1: i32) -> (i32, i32, i32, i32) {
    %c0_i32 = arith.constant 0 : i32
    %c0_i32_0 = arith.constant 0 : i32
    %c0_i32_1 = arith.constant 0 : i32
    return %arg0, %arg1, %c0_i32, %c0_i32_0 : i32, i32, i32, i32
  }
  func.func @transform_1(%arg0: i32, %arg1: i32) -> (i32, i32, i32) {
    %c0_i32 = arith.constant 0 : i32
    %c0_i32_0 = arith.constant 0 : i32
    %c0_i32_1 = arith.constant 0 : i32
    %c0_i32_2 = arith.constant 0 : i32
    return %c0_i32, %c0_i32_0, %c0_i32_1 : i32, i32, i32
  }
  func.func @transform_2(%arg0: i32, %arg1: i32) -> (i32, i32) {
    %c0_i32 = arith.constant 0 : i32
    %c0_i32_0 = arith.constant 0 : i32
    %c0_i32_1 = arith.constant 0 : i32
    return %c0_i32, %c0_i32_0 : i32, i32
  }
  func.func @transform_3(%arg0: i32, %arg1: i32) -> (i32, i32) {
    %c0_i32 = arith.constant 0 : i32
    %c0_i32_0 = arith.constant 0 : i32
    %c0_i32_1 = arith.constant 0 : i32
    return %c0_i32, %c0_i32_0 : i32, i32
  }
  func.func @transform_4(%arg0: i32, %arg1: i32) -> (i32, i32) {
    %c0_i32 = arith.constant 0 : i32
    %c0_i32_0 = arith.constant 0 : i32
    %c0_i32_1 = arith.constant 0 : i32
    return %c0_i32, %c0_i32_0 : i32, i32
  }
  func.func @transform_5(%arg0: i32, %arg1: i32) -> (i32, i32, i32, i32) {
    %c0_i32 = arith.constant 0 : i32
    %c0_i32_0 = arith.constant 0 : i32
    %c0_i32_1 = arith.constant 0 : i32
    return %arg0, %arg1, %c0_i32, %c0_i32_0 : i32, i32, i32, i32
  }
  func.func @transform_6(%arg0: i32, %arg1: i32) -> (i32, i32, i32) {
    %c0_i32 = arith.constant 0 : i32
    %c0_i32_0 = arith.constant 0 : i32
    %c0_i32_1 = arith.constant 0 : i32
    %c0_i32_2 = arith.constant 0 : i32
    return %c0_i32, %c0_i32_0, %c0_i32_1 : i32, i32, i32
  }
  func.func @transform_7(%arg0: i32, %arg1: i32) -> (i32, i32) {
    %c0_i32 = arith.constant 0 : i32
    %c0_i32_0 = arith.constant 0 : i32
    %c0_i32_1 = arith.constant 0 : i32
    return %c0_i32, %c0_i32_0 : i32, i32
  }
  func.func @transform_8(%arg0: i32, %arg1: i32) -> (i32, i32) {
    %c0_i32 = arith.constant 0 : i32
    %c0_i32_0 = arith.constant 0 : i32
    %c0_i32_1 = arith.constant 0 : i32
    return %c0_i32, %c0_i32_0 : i32, i32
  }
  func.func @transform_9(%arg0: i32, %arg1: i32) -> (i32, i32) {
    %c0_i32 = arith.constant 0 : i32
    %c0_i32_0 = arith.constant 0 : i32
    %c0_i32_1 = arith.constant 0 : i32
    return %c0_i32, %c0_i32_0 : i32, i32
  }
  func.func @transform_10(%arg0: i32, %arg1: i32) -> (i32, i32, i32) {
    %c0_i32 = arith.constant 0 : i32
    %c0_i32_0 = arith.constant 0 : i32
    return %arg0, %arg1, %c0_i32 : i32, i32, i32
  }
}

</mosaic_0001>

<bundles_post_ra>
// kernel: basic_block_forward.5
= control target key start
LH: loop header
LB: loop body
LE: loop exit
PB: predicated region body
PF: predicated region fallthrough
CT: control target
= control target key end

     0   :  { %s681_s18 = smov 0   ;;  %s683_s19 = smov 0   ;;  %s745_s0 = inlined_call_operand.vmem [shape: bf16[2,1,18,8], index: 0, kind: input, shape index: {}]   ;;  %s746_s1 = inlined_call_operand.vmem [shape: bf16[3,8,128], index: 1, kind: input, shape index: {}]   ;;  %s747_s2 = inlined_call_operand.vmem [shape: f32[2,128], index: 2, kind: input, shape index: {}]   ;;  %s748_s3 = inlined_call_operand.vmem [shape: f32[1,128], index: 3, kind: input, shape index: {}]   ;;  %s749_s4 = inlined_call_operand.vmem [shape: f32[1,128], index: 4, kind: input, shape index: {}]   ;;  %s750_s5 = inlined_call_operand.vmem [shape: bf16[2,8,128], index: 5, kind: output, shape index: {}]  }
   0x1   :  { %s685_s20 = smov 0  }
   0x2 LB: > { %s27_s21 = sadd.s32 1, %s643_s19  ;;  %p556_p0 = scmp.ge.s32.totalorder %s647_s20, 1  ;;  %s647_s20 = sphi %s685_s20, %s15_s20   ;;  %s643_s19 = sphi %s683_s19, %s752_s19   ;;  %s639_s18 = sphi %s681_s18, %s751_s18  }
   0x3   : > { %p29_p1 = scmp.ge.s32.totalorder %s27_s21, 2  ;;  %p207_p2 = scmp.lt.s32.totalorder %s647_s20, 3 }
   0x5   : > { %s754_s21 = smov (%p29_p1, %s27_s21), 0  ;;  %p208_p3 = pnand %p556_p0, %p207_p2 }
   0x6   : > { %p241_p4 = scmp.lt.s32.totalorder (!%p208_p3), %s639_s18, 1 }
   0x7   : > { %211 = sbr.rel (%p208_p3) target bundleno = 238 (0xee), region = 40 }
   0xc   : > { %v559_v0 = vld [vmem:[%s746_s1 + $0x4] sm:$0xf]  ;;  %vm280_vm0 = vcmask 1043456   ;;  %v259_v1 = vld [vmem:[%s746_s1] sm:$0xf]  ;;  %v649_v2 = vmov 0.0   ;;  %v443_v26 = vlaneseq }
   0xd   : > { %576 = vmatprep.subr.bf16.mxu0 %v649_v2  ;;  %v282_v3 = vsel %vm280_vm0, %v559_v0, 0  ;;  %582 = vmatprep.subr.bf16.mxu1 %v649_v2  ;;  %v328_v4 = vsel %vm280_vm0, %v259_v1, 0  ;;  %vm650_vm1 = vmmov 0   ;;  %s756_s18 = smov (!%p241_p4, %s639_s18), 1  ;;  %vm276_vm2 = vcmask 64512  }
   0xe   : > { %577 = vmatpush3.bf16.msra.mxu0 %v282_v3  ;;  %583 = vmatpush3.bf16.msra.mxu1 %v328_v4  ;;  %s594_s26 = smul.u32 12, %s756_s18  ;;  %v563_v10 = vld [vmem:[%s746_s1 + $0x8] sm:$0xf]  ;;  %v433_v18 = vld [vmem:[%s747_s2] sm:$0x3]  ;;  %v444_v29 = vshrl.u32 %v443_v26, 7 }
   0xf   : > { %578 = vmatprep.mubr.msk.bf16.mxu0 %vm650_vm1, %v649_v2  ;;  %584 = vmatprep.mubr.msk.bf16.mxu1 %vm650_vm1, %v649_v2  ;;  %v390_v14 = vsel %vm280_vm0, %v563_v10, 0  ;;  %v436_v19 = vmul.f32 0.0625, %v433_v18  ;;  %v566_v34 = vld [vmem:[%s748_s3] ss:$0 sm:$0xff]  ;;  %s558_s13 = sshll.u32 %s756_s18, 2 }
  0x10   : > { %588 = vmatprep.subr.bf16.mxu0 %v649_v2  ;;  %s249_s29 = scalar_lea.vmem %s745_s0, %s594_s26  ;;  %v445_v35 = vsub.s32 0, %v444_v29  ;;  %v459_v38 = vsub.s32 1, %v444_v29  ;;  %v567_v47 = vld [vmem:[%s749_s4] ss:$0 sm:$0xff]  ;;  %s256_s16 = scalar_lea.vmem %s750_s5, %s558_s13 }
  0x11   : > { %v621_v5 = vld [vmem:[%s249_s29 + $0x4] sm:$0x1f]   ;;  %v258_v6 = vld [vmem:[%s249_s29] sm:$0xf]  ;;  %v437_v20 = vmul.f32 %v436_v19, %v436_v19 }
  0x12   : > { %v270_v7 = vshrl.u32 %v621_v5, 16  ;;  %v272_v8 = vshll.u32 %v621_v5, 16  ;;  %585 = vmatmul.mubr.msk.bf16.vlgmr.msra.gmra.mxu1 %vm276_vm2, %v258_v6  ;;  %v622_v9 = vld [vmem:[%s249_s29] sm:$0x1f]   ;;  %v446_v41 = vrot.slane %v436_v19, %v445_v35 }
  0x13   : > { %v382_v12 = vshll.u32 %v622_v9, 16  ;;  %v380_v15 = vshrl.u32 %v622_v9, 16  ;;  %v439_v21 = vrot.slane %v437_v20, 7 }
  0x14   : > { %v274_v11 = vrot.slane %v272_v8, 1 }
  0x15   : > { %v384_v16 = vrot.slane %v382_v12, 1  ;;  %v441_v22 = vsub.f32 %v436_v19, %v439_v21 }
  0x16   : > { %v275_v13 = vor.u32 %v274_v11, %v270_v7 }
  0x17   : > { %v385_v17 = vor.u32 %v384_v16, %v380_v15  ;;  %v442_v23 = vmax.f32 %v441_v22, 0.0 }
  0x18   : > { %579 = vmatmul.mubr.msk.bf16.vlgmr.msra.gmra.mxu0 %vm276_vm2, %v275_v13 }
  0x19   : > { %589 = vmatpush3.bf16.msra.mxu0 %v390_v14  ;;  %590 = vmatprep.mubr.msk.bf16.mxu0 %vm650_vm1, %v649_v2  ;;  %v448_v24 = vadd.f32 1e-05, %v442_v23 }
  0x1b   : > { %623 = vrsqrt.f32 %v448_v24 }
  0x20   : > { %591 = vmatmul.mubr.msk.bf16.vlgmr.msra.gmra.mxu0 %vm276_vm2, %v385_v17 }
  0x28   : > { %v624_v32 = vpop.eup %623 }
  0x29   : > { %v456_v37 = vmul.f32 %v624_v32, %v566_v34 }
  0x2b   : > { %v460_v44 = vrot.slane %v456_v37, %v459_v38 }
  0xd2   : > { %v364_v25 = vpop.f32.mrf.mxu1 }
  0xd4   : > { %v586_v27 = vpop.f32.mrf.mxu1 }
  0xd6   : > { %v367_v28 = vpop.f32.mrf.mxu1 }
  0xd8   : > { %v318_v30 = vpop.f32.mrf.mxu0  ;;  %v587_v31 = vpop.f32.mrf.mxu1 }
  0xd9   : > { %v365_v40 = vadd.f32 %v364_v25, %v318_v30 }
  0xda   : > { %v580_v33 = vpop.f32.mrf.mxu0 }
  0xdc   : > { %v321_v36 = vpop.f32.mrf.mxu0 }
  0xde   : > { %v581_v39 = vpop.f32.mrf.mxu0 }
  0xe0   : > { %v426_v42 = vpop.f32.mrf.mxu0 }
  0xe1   : > { %v432_v43 = vadd.f32 %v426_v42, %v365_v40 }
  0xe2   : > { %v592_v45 = vpop.f32.mrf.mxu0 }
  0xe3   : > { %v447_v46 = vsub.f32 %v432_v43, %v446_v41 }
  0xe4   : > { %v429_v48 = vpop.f32.mrf.mxu0 }
  0xe5   : > { %v461_v49 = vmul.f32 %v460_v44, %v447_v46 }
  0xe6   : > { %v593_v50 = vpop.f32.mrf.mxu0 }
  0xe7   : > { %v468_v51 = vadd.f32 %v567_v47, %v461_v49 }
  0xe9   : > { %v469_v52 = vmax.f32 %v468_v51, 0.0 }
  0xeb   : > { %v470_v53 = vpack.c.bf16 %v469_v52, %v469_v52 }
  0xed   : > { %471 = vst [vmem:[%s256_s16] sm:$0xf] %v470_v53 }
  0xee PF: > { %s15_s20 = sadd.s32 1, %s647_s20   ;;  %s751_s18 = smov %s643_s19 }
  0xef   : > { %p12_p5 = scmp.ge.s32.totalorder %s15_s20, 4   ;;  %s752_s19 = smov %s754_s21 }
  0xf1   :  { %14 = sbr.rel (!%p12_p5) target bundleno = 2 (0x2), region = 72 }

// kernel: basic_block_forward.4
= control target key start
LH: loop header
LB: loop body
LE: loop exit
PB: predicated region body
PF: predicated region fallthrough
CT: control target
= control target key end

     0   :  { %s625_s12 = smov 0   ;;  %s627_s13 = smov 0   ;;  %s688_s0 = inlined_call_operand.vmem [shape: bf16[2,1,18,8], index: 0, kind: input, shape index: {}]   ;;  %s689_s1 = inlined_call_operand.vmem [shape: bf16[3,8,128], index: 1, kind: input, shape index: {}]   ;;  %s690_s2 = inlined_call_operand.vmem [shape: bf16[1,8,128], index: 2, kind: input, shape index: {}]   ;;  %s691_s3 = inlined_call_operand.vmem [shape: f32[4,128], index: 3, kind: output, shape index: {}]  }
   0x1   :  { %s629_s14 = smov 0  }
   0x2 LB: > { %s25_s15 = sadd.s32 1, %s596_s13  ;;  %p502_p0 = scmp.ge.s32.totalorder %s600_s14, 1  ;;  %s600_s14 = sphi %s629_s14, %s13_s14   ;;  %s596_s13 = sphi %s627_s13, %s693_s13   ;;  %s592_s12 = sphi %s625_s12, %s692_s12  }
   0x3   : > { %p27_p1 = scmp.ge.s32.totalorder %s25_s15, 2  ;;  %p150_p2 = scmp.lt.s32.totalorder %s600_s14, 3 }
   0x5   : > { %s695_s15 = smov (%p27_p1, %s25_s15), 0  ;;  %p151_p3 = pnand %p502_p0, %p150_p2 }
   0x6   : > { %p173_p4 = scmp.lt.s32.totalorder (!%p151_p3), %s592_s12, 1  ;;  %p183_p5 = scmp.eq.s32.totalorder (!%p151_p3), %s592_s12, 0 }
   0x7   : > { %154 = sbr.rel (%p151_p3) target bundleno = 249 (0xf9), region = 32 }
   0xc   : > { %s697_s12 = smov (!%p173_p4, %s592_s12), 1  ;;  %188 = sbr.rel (!%p183_p5) target bundleno = 17 (0x11), region = 36  ;;  %v602_v0 = vmov (%p183_p5), 0.0  }
   0xd   : > { %s548_s16 = smul.u32 12, %s697_s12  ;;  %189 = vst [vmem:[%s691_s3] sm:$0xf] (%p183_p5), %v602_v0 }
   0xf   : > { %s181_s19 = scalar_lea.vmem %s688_s0, %s548_s16 }
  0x11 PF: > { %v197_v1 = vld [vmem:[%s689_s1] sm:$0xf]  ;;  %vm218_vm0 = vcmask 1043456   ;;  %v505_v2 = vld [vmem:[%s689_s1 + $0x4] sm:$0xf]  ;;  %v603_v3 = vmov 0.0  }
  0x12   : > { %530 = vmatprep.subr.bf16.mxu1 %v603_v3  ;;  %524 = vmatprep.subr.bf16.mxu0 %v603_v3  ;;  %v266_v4 = vsel %vm218_vm0, %v197_v1, 0  ;;  %v220_v5 = vsel %vm218_vm0, %v505_v2, 0  ;;  %v196_v6 = vld [vmem:[%s181_s19] sm:$0xf]  ;;  %vm214_vm1 = vcmask 64512   ;;  %vm604_vm2 = vmmov 0  }
  0x13   : > { %531 = vmatpush3.bf16.msra.mxu1 %v266_v4  ;;  %525 = vmatpush3.bf16.msra.mxu0 %v220_v5  ;;  %v576_v7 = vld [vmem:[%s181_s19 + $0x4] sm:$0x1f]   ;;  %v387_v8 = vld [vmem:[%s690_s2] sm:$0xf]  ;;  %vm446_vm3 = vcmask 1040384   ;;  %vm448_vm4 = vcmask 1041408  }
  0x14   : > { %532 = vmatprep.mubr.msk.bf16.mxu1 %vm604_vm2, %v603_v3  ;;  %526 = vmatprep.mubr.msk.bf16.mxu0 %vm604_vm2, %v603_v3  ;;  %v208_v9 = vshrl.u32 %v576_v7, 16  ;;  %v210_v10 = vshll.u32 %v576_v7, 16  ;;  %v389_v11 = vsel %vm218_vm0, %v387_v8, 0  ;;  %v509_v12 = vld [vmem:[%s689_s1 + $0x8] sm:$0xf]  ;;  %vm450_vm5 = vcmask 1042432  }
  0x15   : > { %536 = vmatprep.subr.bf16.mxu0 %v603_v3  ;;  %542 = vmatprep.subr.bf16.mxu1 %v603_v3  ;;  %v577_v13 = vld [vmem:[%s181_s19] sm:$0x1f]   ;;  %v328_v17 = vsel %vm218_vm0, %v509_v12, 0 }
  0x16   : > { %533 = vmatmul.mubr.msk.bf16.vlgmr.msra.gmra.mxu1 %vm214_vm1, %v196_v6  ;;  %v212_v14 = vrot.slane %v210_v10, 1  ;;  %v320_v15 = vshll.u32 %v577_v13, 16  ;;  %v318_v18 = vshrl.u32 %v577_v13, 16  ;;  %v445_v1 = vld [vmem:[%s691_s3] sm:$0xf] }
  0x17   : > { %543 = vmatpush3.bf16.msra.mxu1 %v389_v11  ;;  %544 = vmatprep.mubr.msk.bf16.mxu1 %vm604_vm2, %v603_v3 }
  0x18   : > { %v213_v16 = vor.u32 %v212_v14, %v208_v9  ;;  %v322_v19 = vrot.slane %v320_v15, 1 }
  0x1a   : > { %527 = vmatmul.mubr.msk.bf16.vlgmr.msra.gmra.mxu0 %vm214_vm1, %v213_v16  ;;  %v323_v20 = vor.u32 %v322_v19, %v318_v18 }
  0x1b   : > { %537 = vmatpush3.bf16.msra.mxu0 %v328_v17  ;;  %538 = vmatprep.mubr.msk.bf16.mxu0 %vm604_vm2, %v603_v3 }
  0x1e   : > { %545 = vmatmul.mubr.msk.bf16.vlgmr.msra.gmra.mxu1 %vm214_vm1, %v213_v16 }
  0x22   : > { %539 = vmatmul.mubr.msk.bf16.vlgmr.msra.gmra.mxu0 %vm214_vm1, %v323_v20 }
  0xd6   : > { %v302_v21 = vpop.f32.mrf.mxu1 }
  0xd8   : > { %v534_v22 = vpop.f32.mrf.mxu1 }
  0xda   : > { %v305_v23 = vpop.f32.mrf.mxu1  ;;  %v256_v24 = vpop.f32.mrf.mxu0 }
  0xdb   : > { %v303_v34 = vadd.f32 %v302_v21, %v256_v24 }
  0xdc   : > { %v535_v25 = vpop.f32.mrf.mxu1  ;;  %v528_v26 = vpop.f32.mrf.mxu0 }
  0xde   : > { %v425_v27 = vpop.f32.mrf.mxu1  ;;  %v259_v28 = vpop.f32.mrf.mxu0 }
  0xdf   : > { %v432_v29 = vrot.slane %v425_v27, 4  ;;  %v438_v30 = vmul.f32 %v425_v27, %v425_v27 }
  0xe0   : > { %v546_v31 = vpop.f32.mrf.mxu1  ;;  %v529_v32 = vpop.f32.mrf.mxu0 }
  0xe1   : > { %v439_v33 = vrot.slane %v438_v30, 4  ;;  %v433_v36 = vadd.f32 %v432_v29, %v425_v27 }
  0xe2   : > { %v428_v35 = vpop.f32.mrf.mxu1  ;;  %v364_v37 = vpop.f32.mrf.mxu0 }
  0xe3   : > { %v440_v38 = vadd.f32 %v439_v33, %v438_v30  ;;  %v370_v39 = vadd.f32 %v364_v37, %v303_v34  ;;  %v434_v44 = vrot.slane %v433_v36, 2 }
  0xe4   : > { %v547_v40 = vpop.f32.mrf.mxu1  ;;  %v540_v41 = vpop.f32.mrf.mxu0 }
  0xe5   : > { %v374_v42 = vrot.slane %v370_v39, 4  ;;  %v380_v43 = vmul.f32 %v370_v39, %v370_v39  ;;  %v441_v46 = vrot.slane %v440_v38, 2  ;;  %v435_v52 = vadd.f32 %v434_v44, %v433_v36 }
  0xe6   : > { %v367_v45 = vpop.f32.mrf.mxu0 }
  0xe7   : > { %v375_v47 = vadd.f32 %v374_v42, %v370_v39  ;;  %v381_v48 = vrot.slane %v380_v43, 4  ;;  %v442_v53 = vadd.f32 %v441_v46, %v440_v38  ;;  %v436_v58 = vrot.slane %v435_v52, 1 }
  0xe8   : > { %v541_v49 = vpop.f32.mrf.mxu0 }
  0xe9   : > { %v376_v50 = vrot.slane %v375_v47, 2  ;;  %v382_v51 = vadd.f32 %v381_v48, %v380_v43  ;;  %v443_v59 = vrot.slane %v442_v53, 1  ;;  %v437_v63 = vadd.f32 %v436_v58, %v435_v52 }
  0xeb   : > { %v377_v54 = vadd.f32 %v376_v50, %v375_v47  ;;  %v383_v55 = vrot.slane %v382_v51, 2  ;;  %v444_v0 = vadd.f32 %v443_v59, %v442_v53 }
  0xed   : > { %v378_v56 = vrot.slane %v377_v54, 1  ;;  %v384_v57 = vadd.f32 %v383_v55, %v382_v51 }
  0xef   : > { %v385_v60 = vrot.slane %v384_v57, 1  ;;  %v379_v61 = vadd.f32 %v378_v56, %v377_v54 }
  0xf1   : > { %v386_v62 = vadd.f32 %v385_v60, %v384_v57 }
  0xf3   : > { %v447_v2 = vsel %vm446_vm3, %v379_v61, %v386_v62 }
  0xf4   : > { %v449_v3 = vsel %vm448_vm4, %v447_v2, %v437_v63 }
  0xf5   : > { %v451_v4 = vsel %vm450_vm5, %v449_v3, %v444_v0 }
  0xf6   : > { %v452_v5 = vadd.f32 %v451_v4, %v445_v1 }
  0xf8   : > { %453 = vst [vmem:[%s691_s3] sm:$0xf] %v452_v5 }
  0xf9 PF: > { %s13_s14 = sadd.s32 1, %s600_s14   ;;  %s692_s12 = smov %s596_s13 }
  0xfa   : > { %p10_p6 = scmp.ge.s32.totalorder %s13_s14, 4   ;;  %s693_s13 = smov %s695_s15 }
  0xfc   :  { %12 = sbr.rel (!%p10_p6) target bundleno = 2 (0x2), region = 64 }

// kernel: basic_block_forward.6
= control target key start
LH: loop header
LB: loop body
LE: loop exit
PB: predicated region body
PF: predicated region fallthrough
CT: control target
= control target key end

     0   :  { %s822_s9 = smov 0   ;;  %s824_s10 = smov 0   ;;  %s968_s0 = inlined_call_operand.vmem [shape: bf16[2,1,10,128], index: 0, kind: input, shape index: {}]   ;;  %s969_s1 = inlined_call_operand.vmem [shape: bf16[3,128,128], index: 1, kind: input, shape index: {}]   ;;  %s970_s2 = inlined_call_operand.vmem [shape: f32[2,128], index: 2, kind: output, shape index: {}]  }
   0x1   :  { %s826_s11 = smov 0  }
   0x2 LB: > { %s24_s12 = sadd.s32 1, %s798_s10  ;;  %p574_p0 = scmp.ge.s32.totalorder %s802_s11, 1  ;;  %s802_s11 = sphi %s826_s11, %s12_s11   ;;  %s798_s10 = sphi %s824_s10, %s972_s10   ;;  %s794_s9 = sphi %s822_s9, %s971_s9  }
   0x3   : > { %p26_p1 = scmp.ge.s32.totalorder %s24_s12, 2  ;;  %p125_p2 = scmp.lt.s32.totalorder %s802_s11, 3 }
   0x5   : > { %s974_s12 = smov (%p26_p1, %s24_s12), 0  ;;  %p126_p3 = pnand %p574_p0, %p125_p2 }
   0x6   : > { %p146_p4 = scmp.lt.s32.totalorder (!%p126_p3), %s794_s9, 1  ;;  %p156_p5 = scmp.eq.s32.totalorder (!%p126_p3), %s794_s9, 0 }
   0x7   : > { %129 = sbr.rel (%p126_p3) target bundleno = 295 (0x127), region = 28 }
   0xc   : > { %s976_s9 = smov (!%p146_p4, %s794_s9), 1  ;;  %161 = sbr.rel (!%p156_p5) target bundleno = 17 (0x11), region = 32  ;;  %v804_v0 = vmov (%p156_p5), 0.0  }
   0xd   : > { %s638_s13 = sshll.u32 %s976_s9, 3  ;;  %162 = vst [vmem:[%s970_s2] sm:$0x3] (%p156_p5), %v804_v0 }
   0xe   : > { %s843_s16 = scalar_lea.vmem %s968_s0, %s638_s13 }
  0x11 PF: > { %v754_v1 = vld [vmem:[%s969_s1 + $0x78] sm:$0xff]   ;;  %v805_v2 = vmov 0.0   ;;  %v756_v4 = vld [vmem:[%s969_s1 + $0x70] sm:$0xff]   ;;  %vm806_vm0 = vmmov 0   ;;  %v758_v6 = vld [vmem:[%s969_s1 + $0x68] sm:$0xff]   ;;  %vm522_vm1 = vcmask 1040384  }
  0x12   : > { %667 = vmatprep.subr.bf16.mxu0 %v805_v2  ;;  %687 = vmatprep.subr.bf16.mxu1 %v805_v2  ;;  %v755_v3 = vld [vmem:[%s969_s1 + $0x38] sm:$0xff]   ;;  %v757_v5 = vld [vmem:[%s969_s1 + $0x30] sm:$0xff]   ;;  %v759_v7 = vld [vmem:[%s969_s1 + $0x28] sm:$0xff]  }
  0x13   : > { %668 = vmatpush3.bf16.msra.mxu0 %v754_v1  ;;  %683 = vmatprep.mubr.msk.bf16.mxu0 %vm806_vm0, %v805_v2  ;;  %v760_v8 = vld [vmem:[%s969_s1 + $0x60] sm:$0xff]   ;;  %v762_v10 = vld [vmem:[%s969_s1 + $0x58] sm:$0xff]   ;;  %v764_v15 = vld [vmem:[%s969_s1 + $0x50] sm:$0xff]  }
  0x14   : > { %688 = vmatpush3.bf16.msra.mxu1 %v755_v3  ;;  %669 = vmatprep.subr.bf16.mxu0 %v805_v2  ;;  %v761_v9 = vld [vmem:[%s969_s1 + $0x20] sm:$0xff]   ;;  %v763_v11 = vld [vmem:[%s969_s1 + $0x18] sm:$0xff]   ;;  %v765_v16 = vld [vmem:[%s969_s1 + $0x10] sm:$0xff]  }
  0x15   : > { %689 = vmatprep.subr.bf16.mxu1 %v805_v2  ;;  %703 = vmatprep.mubr.msk.bf16.mxu1 %vm806_vm0, %v805_v2  ;;  %v169_v12 = vld [vmem:[%s843_s16] sm:$0xf]  ;;  %v186_v13 = vld [vmem:[%s843_s16 + $0x4] sm:$0x1]  ;;  %v766_v18 = vld [vmem:[%s969_s1 + $0x48] sm:$0xff]  }
  0x16   : > { %v594_v14 = vcombine.low %v169_v12, %v186_v13  ;;  %v767_v19 = vld [vmem:[%s969_s1 + $0x8] sm:$0xff]   ;;  %v768_v22 = vld [vmem:[%s969_s1 + $0x40] sm:$0xff]   ;;  %v771_v25 = vld [vmem:[%s969_s1 + $0xb8] sm:$0xff]  }
  0x17   : > { %670 = vmatpush3.bf16.msra.mxu0 %v756_v4  ;;  %v769_v23 = vld [vmem:[%s969_s1] sm:$0xff]   ;;  %v772_v26 = vld [vmem:[%s969_s1 + $0xb0] sm:$0xff]   ;;  %v773_v27 = vld [vmem:[%s969_s1 + $0xa8] sm:$0xff]  }
  0x18   : > { %690 = vmatpush3.bf16.msra.mxu1 %v757_v5  ;;  %671 = vmatprep.subr.bf16.mxu0 %v805_v2  ;;  %v212_v17 = vshll.u32 %v594_v14, 16  ;;  %v210_v20 = vshrl.u32 %v594_v14, 16  ;;  %v774_v28 = vld [vmem:[%s969_s1 + $0xa0] sm:$0xff]   ;;  %v775_v29 = vld [vmem:[%s969_s1 + $0x98] sm:$0xff]   ;;  %v776_v30 = vld [vmem:[%s969_s1 + $0x90] sm:$0xff]  }
  0x19   : > { %691 = vmatprep.subr.bf16.mxu1 %v805_v2  ;;  %v777_v31 = vld [vmem:[%s969_s1 + $0x88] sm:$0xff]   ;;  %v393_v32 = vld [vmem:[%s843_s16] sm:$0xe] }
  0x1a   : > { %v214_v21 = vrot.slane %v212_v17, 1  ;;  %v627_v33 = vcombine.low %v393_v32, %v186_v13  ;;  %v778_v34 = vld [vmem:[%s969_s1 + $0x80] sm:$0xff]  }
  0x1b   : > { %672 = vmatpush3.bf16.msra.mxu0 %v758_v6  ;;  %v521_v63 = vld [vmem:[%s970_s2] sm:$0x3] }
  0x1c   : > { %692 = vmatpush3.bf16.msra.mxu1 %v759_v7  ;;  %673 = vmatprep.subr.bf16.mxu0 %v805_v2  ;;  %v215_v24 = vor.u32 %v214_v21, %v210_v20  ;;  %v414_v35 = vrot.slane %v627_v33, 1 }
  0x1d   : > { %693 = vmatprep.subr.bf16.mxu1 %v805_v2 }
  0x1f   : > { %674 = vmatpush3.bf16.msra.mxu0 %v760_v8 }
  0x20   : > { %694 = vmatpush3.bf16.msra.mxu1 %v761_v9  ;;  %675 = vmatprep.subr.bf16.mxu0 %v805_v2 }
  0x21   : > { %695 = vmatprep.subr.bf16.mxu1 %v805_v2 }
  0x23   : > { %676 = vmatpush3.bf16.msra.mxu0 %v762_v10 }
  0x24   : > { %696 = vmatpush3.bf16.msra.mxu1 %v763_v11  ;;  %677 = vmatprep.subr.bf16.mxu0 %v805_v2 }
  0x25   : > { %697 = vmatprep.subr.bf16.mxu1 %v805_v2 }
  0x27   : > { %678 = vmatpush3.bf16.msra.mxu0 %v764_v15 }
  0x28   : > { %698 = vmatpush3.bf16.msra.mxu1 %v765_v16  ;;  %679 = vmatprep.subr.bf16.mxu0 %v805_v2 }
  0x29   : > { %699 = vmatprep.subr.bf16.mxu1 %v805_v2 }
  0x2b   : > { %680 = vmatpush3.bf16.msra.mxu0 %v766_v18 }
  0x2c   : > { %700 = vmatpush3.bf16.msra.mxu1 %v767_v19  ;;  %681 = vmatprep.subr.bf16.mxu0 %v805_v2 }
  0x2d   : > { %701 = vmatprep.subr.bf16.mxu1 %v805_v2 }
  0x2f   : > { %682 = vmatpush3.bf16.msra.mxu0 %v768_v22 }
  0x30   : > { %702 = vmatpush3.bf16.msra.mxu1 %v769_v23  ;;  %707 = vmatprep.subr.bf16.mxu0 %v805_v2 }
  0x32   : > { %684 = vmatmul.mubr.bf16.vlgmr.msra.gmra.mxu0 %v215_v24 }
  0x33   : > { %704 = vmatmul.mubr.bf16.vlgmr.msra.gmra.mxu1 %v169_v12  ;;  %708 = vmatpush3.bf16.msra.mxu0 %v771_v25 }
  0x34   : > { %709 = vmatprep.subr.bf16.mxu0 %v805_v2  ;;  %723 = vmatprep.mubr.msk.bf16.mxu0 %vm806_vm0, %v805_v2 }
  0x37   : > { %710 = vmatpush3.bf16.msra.mxu0 %v772_v26 }
  0x38   : > { %711 = vmatprep.subr.bf16.mxu0 %v805_v2 }
  0x3b   : > { %712 = vmatpush3.bf16.msra.mxu0 %v773_v27 }
  0x3c   : > { %713 = vmatprep.subr.bf16.mxu0 %v805_v2 }
  0x3f   : > { %714 = vmatpush3.bf16.msra.mxu0 %v774_v28 }
  0x40   : > { %715 = vmatprep.subr.bf16.mxu0 %v805_v2 }
  0x43   : > { %716 = vmatpush3.bf16.msra.mxu0 %v775_v29 }
  0x44   : > { %717 = vmatprep.subr.bf16.mxu0 %v805_v2 }
  0x47   : > { %718 = vmatpush3.bf16.msra.mxu0 %v776_v30 }
  0x48   : > { %719 = vmatprep.subr.bf16.mxu0 %v805_v2 }
  0x4b   : > { %720 = vmatpush3.bf16.msra.mxu0 %v777_v31 }
  0x4c   : > { %721 = vmatprep.subr.bf16.mxu0 %v805_v2 }
  0x4f   : > { %722 = vmatpush3.bf16.msra.mxu0 %v778_v34 }
  0x52   : > { %724 = vmatmul.mubr.bf16.vlgmr.msra.gmra.mxu0 %v414_v35 }
  0xf2   : > { %v299_v36 = vpop.f32.mrf.mxu0 }
  0xf3   : > { %v387_v37 = vpop.f32.mrf.mxu1 }
  0xf4   : > { %v685_v38 = vpop.f32.mrf.mxu0  ;;  %v388_v44 = vadd.f32 %v387_v37, %v299_v36 }
  0xf5   : > { %v705_v39 = vpop.f32.mrf.mxu1 }
  0xf6   : > { %v302_v40 = vpop.f32.mrf.mxu0 }
  0xf7   : > { %v390_v41 = vpop.f32.mrf.mxu1 }
  0xf8   : > { %v686_v42 = vpop.f32.mrf.mxu0 }
  0xf9   : > { %v706_v43 = vpop.f32.mrf.mxu1 }
 0x112   : > { %v498_v45 = vpop.f32.mrf.mxu0 }
 0x113   : > { %v504_v46 = vadd.f32 %v498_v45, %v388_v44 }
 0x114   : > { %v725_v47 = vpop.f32.mrf.mxu0 }
 0x115   : > { %v508_v48 = vrot.slane %v504_v46, 4  ;;  %v514_v49 = vmul.f32 %v504_v46, %v504_v46 }
 0x116   : > { %v501_v50 = vpop.f32.mrf.mxu0 }
 0x117   : > { %v509_v51 = vadd.f32 %v508_v48, %v504_v46  ;;  %v515_v52 = vrot.slane %v514_v49, 4 }
 0x118   : > { %v726_v53 = vpop.f32.mrf.mxu0 }
 0x119   : > { %v510_v54 = vrot.slane %v509_v51, 2  ;;  %v516_v55 = vadd.f32 %v515_v52, %v514_v49 }
 0x11b   : > { %v511_v56 = vadd.f32 %v510_v54, %v509_v51  ;;  %v517_v57 = vrot.slane %v516_v55, 2 }
 0x11d   : > { %v512_v58 = vrot.slane %v511_v56, 1  ;;  %v518_v59 = vadd.f32 %v517_v57, %v516_v55 }
 0x11f   : > { %v519_v60 = vrot.slane %v518_v59, 1  ;;  %v513_v61 = vadd.f32 %v512_v58, %v511_v56 }
 0x121   : > { %v520_v62 = vadd.f32 %v519_v60, %v518_v59 }
 0x123   : > { %v523_v0 = vsel %vm522_vm1, %v513_v61, %v520_v62 }
 0x124   : > { %v524_v1 = vadd.f32 %v523_v0, %v521_v63 }
 0x126   : > { %525 = vst [vmem:[%s970_s2] sm:$0x3] %v524_v1 }
 0x127 PF: > { %s12_s11 = sadd.s32 1, %s802_s11   ;;  %s971_s9 = smov %s798_s10 }
 0x128   : > { %p9_p6 = scmp.ge.s32.totalorder %s12_s11, 4   ;;  %s972_s10 = smov %s974_s12 }
 0x12a   :  { %11 = sbr.rel (!%p9_p6) target bundleno = 2 (0x2), region = 60 }

// kernel: basic_block_forward.7
= control target key start
LH: loop header
LB: loop body
LE: loop exit
PB: predicated region body
PF: predicated region fallthrough
CT: control target
= control target key end

     0   :  { %s1312_s13 = smov 0   ;;  %s1314_s14 = smov 0   ;;  %s1491_s0 = inlined_call_operand.vmem [shape: bf16[2,1,10,128], index: 0, kind: input, shape index: {}]   ;;  %s1492_s1 = inlined_call_operand.vmem [shape: bf16[3,128,128], index: 1, kind: input, shape index: {}]   ;;  %s1493_s2 = inlined_call_operand.vmem [shape: f32[2,128], index: 2, kind: input, shape index: {}]   ;;  %s1494_s3 = inlined_call_operand.vmem [shape: f32[1,128], index: 3, kind: input, shape index: {}]   ;;  %s1495_s4 = inlined_call_operand.vmem [shape: f32[1,128], index: 4, kind: input, shape index: {}]   ;;  %s1496_s5 = inlined_call_operand.vmem [shape: bf16[2,1,18,8], index: 5, kind: input, shape index: {}]   ;;  %s1497_s6 = inlined_call_operand.vmem [shape: bf16[1,8,128], index: 6, kind: input, shape index: {}]   ;;  %s1498_s7 = inlined_call_operand.vmem [shape: f32[2,128], index: 7, kind: input, shape index: {}]   ;;  %s1499_s8 = inlined_call_operand.vmem [shape: f32[1,128], index: 8, kind: input, shape index: {}]   ;;  %s1500_s9 = inlined_call_operand.vmem [shape: f32[1,128], index: 9, kind: input, shape index: {}]   ;;  %s1501_s10 = inlined_call_operand.vmem [shape: f32[2,8,128], index: 10, kind: output, shape index: {}]  }
   0x1   :  { %s1316_s15 = smov 0  }
   0x2 LB: > { %s32_s16 = sadd.s32 1, %s1249_s14  ;;  %p1006_p0 = scmp.ge.s32.totalorder %s1253_s15, 1  ;;  %s1253_s15 = sphi %s1316_s15, %s20_s15   ;;  %s1249_s14 = sphi %s1314_s14, %s1503_s14   ;;  %s1245_s13 = sphi %s1312_s13, %s1502_s13  }
   0x3   : > { %p34_p1 = scmp.ge.s32.totalorder %s32_s16, 2  ;;  %p348_p2 = scmp.lt.s32.totalorder %s1253_s15, 3 }
   0x5   : > { %s1505_s16 = smov (%p34_p1, %s32_s16), 0  ;;  %p349_p3 = pnand %p1006_p0, %p348_p2 }
   0x6   : > { %p401_p4 = scmp.lt.s32.totalorder (!%p349_p3), %s1245_s13, 1 }
   0x7   : > { %352 = sbr.rel (%p349_p3) target bundleno = 283 (0x11b), region = 60 }
   0xc   : > { %v1200_v0 = vld [vmem:[%s1492_s1 + $0x78] sm:$0xff]   ;;  %v1255_v1 = vmov 0.0   ;;  %v1202_v3 = vld [vmem:[%s1492_s1 + $0x70] sm:$0xff]   ;;  %vm1256_vm0 = vmmov 0   ;;  %v1204_v5 = vld [vmem:[%s1492_s1 + $0x68] sm:$0xff]   ;;  %s1507_s13 = smov (!%p401_p4, %s1245_s13), 1 }
   0xd   : > { %1107 = vmatprep.subr.bf16.mxu0 %v1255_v1  ;;  %1127 = vmatprep.subr.bf16.mxu1 %v1255_v1  ;;  %v1201_v2 = vld [vmem:[%s1492_s1 + $0x38] sm:$0xff]   ;;  %v1203_v4 = vld [vmem:[%s1492_s1 + $0x30] sm:$0xff]   ;;  %v1205_v6 = vld [vmem:[%s1492_s1 + $0x28] sm:$0xff]   ;;  %s1077_s11 = sshll.u32 %s1507_s13, 3  ;;  %s1173_s29 = smul.u32 12, %s1507_s13  ;;  %vm818_vm1 = vcmask 1043456  }
   0xe   : > { %1108 = vmatpush3.bf16.msra.mxu0 %v1200_v0  ;;  %1123 = vmatprep.mubr.msk.bf16.mxu0 %vm1256_vm0, %v1255_v1  ;;  %v1206_v7 = vld [vmem:[%s1492_s1 + $0x60] sm:$0xff]   ;;  %s1374_s20 = scalar_lea.vmem %s1491_s0, %s1077_s11  ;;  %v1208_v9 = vld [vmem:[%s1492_s1 + $0x58] sm:$0xff]   ;;  %v1210_v14 = vld [vmem:[%s1492_s1 + $0x50] sm:$0xff]   ;;  %vm814_vm2 = vcmask 64512   ;;  %s425_s30 = scalar_lea.vmem %s1501_s10, %s1077_s11 }
   0xf   : > { %1128 = vmatpush3.bf16.msra.mxu1 %v1201_v2  ;;  %1109 = vmatprep.subr.bf16.mxu0 %v1255_v1  ;;  %v1207_v8 = vld [vmem:[%s1492_s1 + $0x20] sm:$0xff]   ;;  %v1209_v10 = vld [vmem:[%s1492_s1 + $0x18] sm:$0xff]   ;;  %v1211_v15 = vld [vmem:[%s1492_s1 + $0x10] sm:$0xff]   ;;  %s418_s22 = scalar_lea.vmem %s1496_s5, %s1173_s29  ;;  %v773_v2 = vlaneseq }
  0x10   : > { %1129 = vmatprep.subr.bf16.mxu1 %v1255_v1  ;;  %1143 = vmatprep.mubr.msk.bf16.mxu1 %vm1256_vm0, %v1255_v1  ;;  %v427_v11 = vld [vmem:[%s1374_s20] sm:$0xf]  ;;  %v1386_v12 = vld [vmem:[%s1374_s20 + $0x4] sm:$0x1]  ;;  %v1212_v17 = vld [vmem:[%s1492_s1 + $0x48] sm:$0xff]  }
  0x11   : > { %v1027_v13 = vcombine.low %v427_v11, %v1386_v12  ;;  %v1213_v18 = vld [vmem:[%s1492_s1 + $0x8] sm:$0xff]   ;;  %v1214_v21 = vld [vmem:[%s1492_s1 + $0x40] sm:$0xff]   ;;  %v1217_v26 = vld [vmem:[%s1492_s1 + $0xb8] sm:$0xff]  }
  0x12   : > { %1110 = vmatpush3.bf16.msra.mxu0 %v1202_v3  ;;  %v1224_v22 = vld [vmem:[%s418_s22 + $0x4] sm:$0x1f]   ;;  %v801_v25 = vld [vmem:[%s1497_s6] sm:$0xf]  ;;  %v1218_v29 = vld [vmem:[%s1492_s1 + $0xb0] sm:$0xff]  }
  0x13   : > { %1130 = vmatpush3.bf16.msra.mxu1 %v1203_v4  ;;  %1111 = vmatprep.subr.bf16.mxu0 %v1255_v1  ;;  %v470_v16 = vshll.u32 %v1027_v13, 16  ;;  %v468_v19 = vshrl.u32 %v1027_v13, 16  ;;  %v1215_v23 = vld [vmem:[%s1492_s1] sm:$0xff]   ;;  %v810_v27 = vshll.u32 %v1224_v22, 16  ;;  %v820_v28 = vsel %vm818_vm1, %v801_v25, 0  ;;  %v1219_v32 = vld [vmem:[%s1492_s1 + $0xa8] sm:$0xff]  }
  0x14   : > { %1131 = vmatprep.subr.bf16.mxu1 %v1255_v1  ;;  %v808_v30 = vshrl.u32 %v1224_v22, 16  ;;  %v1220_v34 = vld [vmem:[%s1492_s1 + $0xa0] sm:$0xff]   ;;  %v1221_v35 = vld [vmem:[%s1492_s1 + $0x98] sm:$0xff]   ;;  %v1222_v36 = vld [vmem:[%s1492_s1 + $0x90] sm:$0xff]  }
  0x15   : > { %v472_v20 = vrot.slane %v470_v16, 1  ;;  %v812_v31 = vrot.slane %v810_v27, 1  ;;  %v1223_v37 = vld [vmem:[%s1492_s1 + $0x88] sm:$0xff]   ;;  %v651_v38 = vld [vmem:[%s1374_s20] sm:$0xe] }
  0x16   : > { %1112 = vmatpush3.bf16.msra.mxu0 %v1204_v5  ;;  %v1060_v39 = vcombine.low %v651_v38, %v1386_v12  ;;  %v1225_v40 = vld [vmem:[%s1492_s1 + $0x80] sm:$0xff]   ;;  %v774_v5 = vshrl.u32 %v773_v2, 7 }
  0x17   : > { %1132 = vmatpush3.bf16.msra.mxu1 %v1205_v6  ;;  %1113 = vmatprep.subr.bf16.mxu0 %v1255_v1  ;;  %v473_v24 = vor.u32 %v472_v20, %v468_v19  ;;  %v813_v33 = vor.u32 %v812_v31, %v808_v30  ;;  %v862_v42 = vld [vmem:[%s1498_s7] sm:$0x3] }
  0x18   : > { %1133 = vmatprep.subr.bf16.mxu1 %v1255_v1  ;;  %v672_v41 = vrot.slane %v1060_v39, 1  ;;  %v865_v43 = vmul.f32 0.0625, %v862_v42  ;;  %v763_v44 = vld [vmem:[%s1493_s2] sm:$0x3]  ;;  %v775_v6 = vsub.s32 0, %v774_v5 }
  0x19   : > { %v766_v46 = vmul.f32 0.0625, %v763_v44  ;;  %v1069_v13 = vld [vmem:[%s1494_s3] ss:$0 sm:$0xff] }
  0x1a   : > { %1114 = vmatpush3.bf16.msra.mxu0 %v1206_v7  ;;  %v866_v45 = vmul.f32 %v865_v43, %v865_v43 }
  0x1b   : > { %1134 = vmatpush3.bf16.msra.mxu1 %v1207_v8  ;;  %1115 = vmatprep.subr.bf16.mxu0 %v1255_v1  ;;  %v767_v48 = vmul.f32 %v766_v46, %v766_v46  ;;  %v1073_v8 = vld [vmem:[%s1499_s8] ss:$0 sm:$0xff] }
  0x1c   : > { %1135 = vmatprep.subr.bf16.mxu1 %v1255_v1  ;;  %v868_v47 = vrot.slane %v866_v45, 7 }
  0x1d   : > { %v769_v50 = vrot.slane %v767_v48, 7 }
  0x1e   : > { %1116 = vmatpush3.bf16.msra.mxu0 %v1208_v9  ;;  %v870_v49 = vsub.f32 %v865_v43, %v868_v47  ;;  %v789_v9 = vsub.s32 1, %v774_v5 }
  0x1f   : > { %1136 = vmatpush3.bf16.msra.mxu1 %v1209_v10  ;;  %1117 = vmatprep.subr.bf16.mxu0 %v1255_v1  ;;  %v771_v54 = vsub.f32 %v766_v46, %v769_v50  ;;  %v875_v10 = vrot.slane %v865_v43, %v775_v6 }
  0x20   : > { %1137 = vmatprep.subr.bf16.mxu1 %v1255_v1  ;;  %v871_v53 = vmax.f32 %v870_v49, 0.0 }
  0x21   : > { %v772_v60 = vmax.f32 %v771_v54, 0.0 }
  0x22   : > { %1118 = vmatpush3.bf16.msra.mxu0 %v1210_v14  ;;  %v877_v59 = vadd.f32 1e-05, %v871_v53 }
  0x23   : > { %1138 = vmatpush3.bf16.msra.mxu1 %v1211_v15  ;;  %1119 = vmatprep.subr.bf16.mxu0 %v1255_v1  ;;  %v778_v0 = vadd.f32 1e-05, %v772_v60 }
  0x24   : > { %1139 = vmatprep.subr.bf16.mxu1 %v1255_v1  ;;  %1227 = vrsqrt.f32 %v877_v59 }
  0x25   : > { %1229 = vrsqrt.f32 %v778_v0 }
  0x26   : > { %1120 = vmatpush3.bf16.msra.mxu0 %v1212_v17 }
  0x27   : > { %1140 = vmatpush3.bf16.msra.mxu1 %v1213_v18  ;;  %1121 = vmatprep.subr.bf16.mxu0 %v1255_v1  ;;  %v776_v18 = vrot.slane %v766_v46, %v775_v6 }
  0x28   : > { %1141 = vmatprep.subr.bf16.mxu1 %v1255_v1 }
  0x2a   : > { %1122 = vmatpush3.bf16.msra.mxu0 %v1214_v21 }
  0x2b   : > { %1142 = vmatpush3.bf16.msra.mxu1 %v1215_v23  ;;  %1147 = vmatprep.subr.bf16.mxu0 %v1255_v1  ;;  %v1074_v23 = vld [vmem:[%s1500_s9] ss:$0 sm:$0xff] }
  0x2c   : > { %1167 = vmatprep.subr.bf16.mxu1 %v1255_v1 }
  0x2d   : > { %1124 = vmatmul.mubr.bf16.vlgmr.msra.gmra.mxu0 %v473_v24 }
  0x2e   : > { %1144 = vmatmul.mubr.bf16.vlgmr.msra.gmra.mxu1 %v427_v11  ;;  %1148 = vmatpush3.bf16.msra.mxu0 %v1217_v26  ;;  %v1070_v26 = vld [vmem:[%s1495_s4] ss:$0 sm:$0xff] }
  0x2f   : > { %1149 = vmatprep.subr.bf16.mxu0 %v1255_v1  ;;  %1168 = vmatpush3.bf16.msra.mxu1 %v820_v28 }
  0x30   : > { %1169 = vmatprep.mubr.msk.bf16.mxu1 %vm1256_vm0, %v1255_v1  ;;  %1163 = vmatprep.mubr.msk.bf16.mxu0 %vm1256_vm0, %v1255_v1 }
  0x31   : > { %v1228_v7 = vpop.eup %1227 }
  0x32   : > { %1150 = vmatpush3.bf16.msra.mxu0 %v1218_v29  ;;  %v885_v11 = vmul.f32 %v1228_v7, %v1073_v8  ;;  %v1230_v12 = vpop.eup %1229 }
  0x33   : > { %1151 = vmatprep.subr.bf16.mxu0 %v1255_v1  ;;  %v786_v16 = vmul.f32 %v1230_v12, %v1069_v13 }
  0x34   : > { %v889_v15 = vrot.slane %v885_v11, %v789_v9 }
  0x35   : > { %v790_v22 = vrot.slane %v786_v16, %v789_v9 }
  0x36   : > { %1152 = vmatpush3.bf16.msra.mxu0 %v1219_v32  ;;  %1170 = vmatmul.mubr.msk.bf16.vlgmr.msra.gmra.mxu1 %vm814_vm2, %v813_v33 }
  0x37   : > { %1153 = vmatprep.subr.bf16.mxu0 %v1255_v1 }
  0x3a   : > { %1154 = vmatpush3.bf16.msra.mxu0 %v1220_v34 }
  0x3b   : > { %1155 = vmatprep.subr.bf16.mxu0 %v1255_v1 }
  0x3e   : > { %1156 = vmatpush3.bf16.msra.mxu0 %v1221_v35 }
  0x3f   : > { %1157 = vmatprep.subr.bf16.mxu0 %v1255_v1 }
  0x42   : > { %1158 = vmatpush3.bf16.msra.mxu0 %v1222_v36 }
  0x43   : > { %1159 = vmatprep.subr.bf16.mxu0 %v1255_v1 }
  0x46   : > { %1160 = vmatpush3.bf16.msra.mxu0 %v1223_v37 }
  0x47   : > { %1161 = vmatprep.subr.bf16.mxu0 %v1255_v1 }
  0x4a   : > { %1162 = vmatpush3.bf16.msra.mxu0 %v1225_v40 }
  0x4d   : > { %1164 = vmatmul.mubr.bf16.vlgmr.msra.gmra.mxu0 %v672_v41 }
  0xed   : > { %v557_v51 = vpop.f32.mrf.mxu0 }
  0xee   : > { %v645_v52 = vpop.f32.mrf.mxu1 }
  0xef   : > { %v1125_v55 = vpop.f32.mrf.mxu0  ;;  %v646_v17 = vadd.f32 %v645_v52, %v557_v51 }
  0xf0   : > { %v1145_v56 = vpop.f32.mrf.mxu1 }
  0xf1   : > { %v560_v57 = vpop.f32.mrf.mxu0 }
  0xf2   : > { %v648_v58 = vpop.f32.mrf.mxu1 }
  0xf3   : > { %v1126_v61 = vpop.f32.mrf.mxu0 }
  0xf4   : > { %v1146_v62 = vpop.f32.mrf.mxu1 }
  0xf6   : > { %v856_v63 = vpop.f32.mrf.mxu1 }
  0xf7   : > { %v876_v14 = vsub.f32 %v856_v63, %v875_v10 }
  0xf8   : > { %v1171_v1 = vpop.f32.mrf.mxu1 }
  0xf9   : > { %v890_v20 = vmul.f32 %v889_v15, %v876_v14 }
  0xfa   : > { %v859_v3 = vpop.f32.mrf.mxu1 }
  0xfb   : > { %v897_v28 = vadd.f32 %v1074_v23, %v890_v20 }
  0xfc   : > { %v1172_v4 = vpop.f32.mrf.mxu1 }
 0x10d   : > { %v756_v19 = vpop.f32.mrf.mxu0 }
 0x10e   : > { %v762_v21 = vadd.f32 %v756_v19, %v646_v17 }
 0x10f   : > { %v1165_v24 = vpop.f32.mrf.mxu0 }
 0x110   : > { %v777_v25 = vsub.f32 %v762_v21, %v776_v18 }
 0x111   : > { %v759_v27 = vpop.f32.mrf.mxu0 }
 0x112   : > { %v791_v29 = vmul.f32 %v790_v22, %v777_v25 }
 0x113   : > { %v1166_v30 = vpop.f32.mrf.mxu0 }
 0x114   : > { %v798_v31 = vadd.f32 %v1070_v26, %v791_v29 }
 0x116   : > { %v898_v32 = vadd.f32 %v897_v28, %v798_v31 }
 0x118   : > { %v899_v33 = vmax.f32 %v898_v32, 0.0 }
 0x11a   : > { %900 = vst [vmem:[%s425_s30] sm:$0xff] %v899_v33 }
 0x11b PF: > { %s20_s15 = sadd.s32 1, %s1253_s15   ;;  %s1502_s13 = smov %s1249_s14 }
 0x11c   : > { %p17_p5 = scmp.ge.s32.totalorder %s20_s15, 4   ;;  %s1503_s14 = smov %s1505_s16 }
 0x11e   :  { %19 = sbr.rel (!%p17_p5) target bundleno = 2 (0x2), region = 95 }

</bundles_post_ra>
